<compile_context>
chip_gen: v7x
topology: tpu7x:2x2x1
jax: 0.10.0
libtpu: 0.0.40
codegen_flags: <defaults>
</compile_context>

<pallas_src>
import jax
import jax.numpy as jnp
from jax import lax
from jax.experimental import pallas as pl
from jax.experimental.pallas import tpu as pltpu


def dssm_kernel(ue_ref, uw_ref, ne_ref, nw_ref, w3_ref, b3_ref, w4_ref, b4_ref,
                out_ref):
    TB, Lu, H = ue_ref.shape
    _, N, Ln, _ = ne_ref.shape
    F = w4_ref.shape[1]
    NPAD = out_ref.shape[1]

    # ---- weighted sum of word embeddings over the sequence axis (f32, VPU) ----
    ue = jnp.sum(ue_ref[...] * uw_ref[...][:, :, None], axis=1)            # [TB, H]
    ne_seq = ne_ref[...].reshape(TB * N, Ln, H)
    nw = nw_ref[...].reshape(TB * N, Ln)
    ne = jnp.sum(ne_seq * nw[:, :, None], axis=1)                          # [TB*N, H]

    # ---- fused dense chain: one MXU pass over W3 and one over W4 (bf16) ----
    x = jnp.concatenate([ue, ne], axis=0).astype(jnp.bfloat16)             # [TB*(N+1), H]
    l3 = jnp.tanh(jnp.dot(x, w3_ref[...],
                          preferred_element_type=jnp.float32) + b3_ref[...])
    y = jnp.tanh(jnp.dot(l3.astype(jnp.bfloat16), w4_ref[...],
                         preferred_element_type=jnp.float32) + b4_ref[...])  # [TB*(N+1), F]

    user_y = y[:TB]                                                        # [TB, F]
    news_y = y[TB:].reshape(TB, N, F)                                      # [TB, N, F]

    # ---- cosine similarity epilogue (f32, fused rsqrt on EUP) ----
    dot = jnp.sum(user_y[:, None, :] * news_y, axis=2)                     # [TB, N]
    un2 = jnp.sum(user_y * user_y, axis=1)[:, None]                        # [TB, 1]
    nn2 = jnp.sum(news_y * news_y, axis=2)                                 # [TB, N]
    res = dot * lax.rsqrt(un2 * nn2)                                       # [TB, N]

    # Lane-dense staging slab: full [TB, NPAD] block writeback.
    if NPAD == N:
        out_ref[...] = res
    else:
        out_ref[...] = jnp.zeros((TB, NPAD), jnp.float32)
        out_ref[:, :N] = res


def dssm_forward(params, user_indices, user_weights, user_seq_len,
                 news_indices, news_weights, news_seq_len, *, tb=8):
    # user_seq_len / news_seq_len are unused by the reference forward pass.
    del user_seq_len, news_seq_len
    emb = params["emb"]                               # [V, H] f32
    w3 = params["w3"].astype(jnp.bfloat16)            # [H, H] input-major
    b3 = params["b3"][None, :].astype(jnp.float32)    # [1, H]
    w4 = params["w4"].astype(jnp.bfloat16)            # [H, F] input-major
    b4 = params["b4"][None, :].astype(jnp.float32)    # [1, F]

    B, Lu = user_indices.shape
    _, N, Ln = news_indices.shape
    H = emb.shape[1]
    F = w4.shape[1]

    # Glue: embedding-table gather (kept in f32 so the weighted sum is exact).
    ue_seq = emb[user_indices]                        # [B, Lu, H]
    ne_seq = emb[news_indices]                        # [B, N, Ln, H]
    uw = user_weights
    nw = news_weights

    # Pad the batch to a multiple of the row tile so the grid is uniform.
    b_pad = tb * pl.cdiv(B, tb)
    pad = b_pad - B
    if pad:
        ue_seq = jnp.pad(ue_seq, ((0, pad), (0, 0), (0, 0)))
        uw = jnp.pad(uw, ((0, pad), (0, 0)))
        ne_seq = jnp.pad(ne_seq, ((0, pad), (0, 0), (0, 0), (0, 0)))
        nw = jnp.pad(nw, ((0, pad), (0, 0), (0, 0)))

    n_pad = 128 * pl.cdiv(N, 128)                     # lane-dense output width
    grid = (b_pad // tb,)

    logits_padded = pl.pallas_call(
        dssm_kernel,
        out_shape=jax.ShapeDtypeStruct((b_pad, n_pad), jnp.float32),
        grid_spec=pltpu.PrefetchScalarGridSpec(
            num_scalar_prefetch=0,
            grid=grid,
            in_specs=[
                pl.BlockSpec((tb, Lu, H), lambda i: (i, 0, 0)),
                pl.BlockSpec((tb, Lu), lambda i: (i, 0)),
                pl.BlockSpec((tb, N, Ln, H), lambda i: (i, 0, 0, 0)),
                pl.BlockSpec((tb, N, Ln), lambda i: (i, 0, 0)),
                pl.BlockSpec((H, H), lambda i: (0, 0)),   # W3 resident
                pl.BlockSpec((1, H), lambda i: (0, 0)),   # b3 resident
                pl.BlockSpec((H, F), lambda i: (0, 0)),   # W4 resident
                pl.BlockSpec((1, F), lambda i: (0, 0)),   # b4 resident
            ],
            out_specs=pl.BlockSpec((tb, n_pad), lambda i: (i, 0)),
        ),
        compiler_params=pltpu.CompilerParams(
            dimension_semantics=("parallel",),
            vmem_limit_bytes=32 * 1024 * 1024,
        ),
    )(ue_seq, uw, ne_seq, nw, w3, b3, w4, b4)

    return logits_padded[:B, :N]


def dssm_reference(params, user_indices, user_weights, news_indices, news_weights):
    """Pure-JAX f32 reference mirroring the PyTorch forward (dropout = identity)."""
    emb, w3, b3, w4, b4 = (params["emb"], params["w3"], params["b3"],
                           params["w4"], params["b4"])
    user_embedding = jnp.sum(emb[user_indices] * user_weights[:, :, None], axis=1)
    news_embedding = jnp.sum(emb[news_indices] * news_weights[:, :, :, None], axis=2)
    user_l3 = jnp.tanh(user_embedding @ w3 + b3)
    news_l3 = jnp.tanh(news_embedding @ w3 + b3)
    user_y = jnp.tanh(user_l3 @ w4 + b4)[:, None, :]
    news_y = jnp.tanh(news_l3 @ w4 + b4)
    norm = jnp.linalg.norm(user_y, axis=2) * jnp.linalg.norm(news_y, axis=2)
    return jnp.sum(user_y * news_y, axis=2) / norm


def init_params(key, vocab, hidden, feature):
    k_emb, k_w3, k_b3, k_w4, k_b4 = jax.random.split(key, 5)
    # nn.init.uniform_(emb, -0.1, 0.1)
    emb = jax.random.uniform(k_emb, (vocab, hidden), jnp.float32, -0.1, 0.1)
    # xavier_uniform with gain = calculate_gain('tanh') = 5/3 (stored input-major).
    gain = 5.0 / 3.0
    bound3 = gain * jnp.sqrt(6.0 / (hidden + hidden))
    w3 = jax.random.uniform(k_w3, (hidden, hidden), jnp.float32, -bound3, bound3)
    bound4 = gain * jnp.sqrt(6.0 / (hidden + feature))
    w4 = jax.random.uniform(k_w4, (hidden, feature), jnp.float32, -bound4, bound4)
    # Linear bias default init: U(-1/sqrt(fan_in), 1/sqrt(fan_in)).
    bb = 1.0 / jnp.sqrt(hidden)
    b3 = jax.random.uniform(k_b3, (hidden,), jnp.float32, -bb, bb)
    b4 = jax.random.uniform(k_b4, (feature,), jnp.float32, -bb, bb)
    return {"emb": emb, "w3": w3, "b3": b3, "w4": w4, "b4": b4}


if __name__ == "__main__":
    VOCAB, HIDDEN, FEATURE = 1000, 128, 128
    B, N, LU, LN = 2, 8, 8, 8

    key = jax.random.PRNGKey(0)
    k_params, k_ui, k_uw, k_ni, k_nw = jax.random.split(key, 5)

    params = init_params(k_params, VOCAB, HIDDEN, FEATURE)

    user_indices = jax.random.randint(k_ui, (B, LU), 0, VOCAB, dtype=jnp.int32)
    user_weights = jax.random.uniform(k_uw, (B, LU), jnp.float32)
    user_seq_len = jnp.full((B,), LU, dtype=jnp.int32)
    news_indices = jax.random.randint(k_ni, (B, N, LN), 0, VOCAB, dtype=jnp.int32)
    news_weights = jax.random.uniform(k_nw, (B, N, LN), jnp.float32)
    news_seq_len = jnp.full((B, N), LN, dtype=jnp.int32)

    logits = dssm_forward(params, user_indices, user_weights, user_seq_len,
                          news_indices, news_weights, news_seq_len)
    logits = jax.block_until_ready(logits)

    ref = dssm_reference(params, user_indices, user_weights,
                         news_indices, news_weights)
    assert logits.shape == (B, N)
    assert bool(jnp.all(jnp.isfinite(logits)))
    # bf16 MXU path vs. f32 reference -> loosened tolerance.
    assert jnp.allclose(logits, ref, atol=1e-2, rtol=1e-2), (logits, ref)

    print("KERNEL_OK")
</pallas_src>

<mosaic_0001>
module attributes {stable_mosaic.version = 11 : i64} {
  func.func @dssm_kernel(%arg0: i32, %arg1: memref<8x8x128xf32, #tpu.memory_space<vmem>>, %arg2: memref<8x8xf32, #tpu.memory_space<vmem>>, %arg3: memref<8x8x8x128xf32, #tpu.memory_space<vmem>>, %arg4: memref<8x8x8xf32, #tpu.memory_space<vmem>>, %arg5: memref<128x128xbf16, #tpu.memory_space<vmem>>, %arg6: memref<1x128xf32, #tpu.memory_space<vmem>>, %arg7: memref<128x128xbf16, #tpu.memory_space<vmem>>, %arg8: memref<1x128xf32, #tpu.memory_space<vmem>>, %arg9: memref<8x128xf32, #tpu.memory_space<vmem>>) attributes {dimension_semantics = [#tpu.dimension_semantics<parallel>], iteration_bounds = array<i64: 1>, scalar_prefetch = 0 : i64, scratch_operands = 0 : i64, tpu.core_type = #tpu.core_type<tc>, window_params = [{transform_indices = @transform_0, window_bounds = array<i64: 8, 8, 128>}, {transform_indices = @transform_1, window_bounds = array<i64: 8, 8>}, {transform_indices = @transform_2, window_bounds = array<i64: 8, 8, 8, 128>}, {transform_indices = @transform_3, window_bounds = array<i64: 8, 8, 8>}, {pipeline_mode = #tpu.pipeline_mode<synchronous>, transform_indices = @transform_4, window_bounds = array<i64: 128, 128>}, {pipeline_mode = #tpu.pipeline_mode<synchronous>, transform_indices = @transform_5, window_bounds = array<i64: 1, 128>}, {pipeline_mode = #tpu.pipeline_mode<synchronous>, transform_indices = @transform_6, window_bounds = array<i64: 128, 128>}, {pipeline_mode = #tpu.pipeline_mode<synchronous>, transform_indices = @transform_7, window_bounds = array<i64: 1, 128>}, {transform_indices = @transform_8, window_bounds = array<i64: 8, 128>}]} {
    %c0 = arith.constant 0 : index
    %c0_0 = arith.constant 0 : index
    %c0_1 = arith.constant 0 : index
    %0 = vector.load %arg1[%c0, %c0_0, %c0_1] : memref<8x8x128xf32, #tpu.memory_space<vmem>>, vector<8x8x128xf32>
    %c0_2 = arith.constant 0 : index
    %c0_3 = arith.constant 0 : index
    %1 = vector.load %arg2[%c0_2, %c0_3] : memref<8x8xf32, #tpu.memory_space<vmem>>, vector<8x8xf32>
    %2 = vector.shape_cast %1 : vector<8x8xf32> to vector<8x8x1xf32>
    %3 = vector.broadcast %2 : vector<8x8x1xf32> to vector<8x8x128xf32>
    %4 = arith.mulf %0, %3 : vector<8x8x128xf32>
    %cst = arith.constant dense<0.000000e+00> : vector<8x128xf32>
    %5 = vector.multi_reduction <add>, %4, %cst [1] : vector<8x8x128xf32> to vector<8x128xf32>
    %c0_4 = arith.constant 0 : index
    %c0_5 = arith.constant 0 : index
    %c0_6 = arith.constant 0 : index
    %c0_7 = arith.constant 0 : index
    %6 = vector.load %arg3[%c0_4, %c0_5, %c0_6, %c0_7] : memref<8x8x8x128xf32, #tpu.memory_space<vmem>>, vector<8x8x8x128xf32>
    %7 = vector.shape_cast %6 : vector<8x8x8x128xf32> to vector<64x8x128xf32>
    %c0_8 = arith.constant 0 : index
    %c0_9 = arith.constant 0 : index
    %c0_10 = arith.constant 0 : index
    %8 = vector.load %arg4[%c0_8, %c0_9, %c0_10] : memref<8x8x8xf32, #tpu.memory_space<vmem>>, vector<8x8x8xf32>
    %9 = vector.shape_cast %8 : vector<8x8x8xf32> to vector<64x8xf32>
    %10 = vector.shape_cast %9 : vector<64x8xf32> to vector<64x8x1xf32>
    %11 = vector.broadcast %10 : vector<64x8x1xf32> to vector<64x8x128xf32>
    %12 = arith.mulf %7, %11 : vector<64x8x128xf32>
    %cst_11 = arith.constant dense<0.000000e+00> : vector<64x128xf32>
    %13 = vector.multi_reduction <add>, %12, %cst_11 [1] : vector<64x8x128xf32> to vector<64x128xf32>
    %14 = tpu.concatenate %5, %13 in 0 : vector<8x128xf32>, vector<64x128xf32> -> vector<72x128xf32>
    %15 = arith.truncf %14 : vector<72x128xf32> to vector<72x128xbf16>
    %c0_12 = arith.constant 0 : index
    %c0_13 = arith.constant 0 : index
    %16 = vector.load %arg5[%c0_12, %c0_13] : memref<128x128xbf16, #tpu.memory_space<vmem>>, vector<128x128xbf16>
    %cst_14 = arith.constant dense<0.000000e+00> : vector<72x128xf32>
    %17 = tpu.matmul %15, %16, %cst_14 {dimension_numbers = #tpu.dot_dimension_numbers<[1], [0], [0], [1], [0, 0, 1, 1], [], []>} : vector<72x128xbf16>, vector<128x128xbf16>, vector<72x128xf32> -> vector<72x128xf32>
    %c0_15 = arith.constant 0 : index
    %c0_16 = arith.constant 0 : index
    %18 = vector.load %arg6[%c0_15, %c0_16] : memref<1x128xf32, #tpu.memory_space<vmem>>, vector<1x128xf32>
    %19 = vector.broadcast %18 : vector<1x128xf32> to vector<72x128xf32>
    %20 = arith.addf %17, %19 : vector<72x128xf32>
    %21 = math.tanh %20 : vector<72x128xf32>
    %22 = arith.truncf %21 : vector<72x128xf32> to vector<72x128xbf16>
    %c0_17 = arith.constant 0 : index
    %c0_18 = arith.constant 0 : index
    %23 = vector.load %arg7[%c0_17, %c0_18] : memref<128x128xbf16, #tpu.memory_space<vmem>>, vector<128x128xbf16>
    %cst_19 = arith.constant dense<0.000000e+00> : vector<72x128xf32>
    %24 = tpu.matmul %22, %23, %cst_19 {dimension_numbers = #tpu.dot_dimension_numbers<[1], [0], [0], [1], [0, 0, 1, 1], [], []>} : vector<72x128xbf16>, vector<128x128xbf16>, vector<72x128xf32> -> vector<72x128xf32>
    %c0_20 = arith.constant 0 : index
    %c0_21 = arith.constant 0 : index
    %25 = vector.load %arg8[%c0_20, %c0_21] : memref<1x128xf32, #tpu.memory_space<vmem>>, vector<1x128xf32>
    %26 = vector.broadcast %25 : vector<1x128xf32> to vector<72x128xf32>
    %27 = arith.addf %24, %26 : vector<72x128xf32>
    %28 = math.tanh %27 : vector<72x128xf32>
    %29 = vector.extract_strided_slice %28 {offsets = [0, 0], sizes = [8, 128], strides = [1, 1]} : vector<72x128xf32> to vector<8x128xf32>
    %30 = vector.extract_strided_slice %28 {offsets = [8, 0], sizes = [64, 128], strides = [1, 1]} : vector<72x128xf32> to vector<64x128xf32>
    %31 = vector.shape_cast %30 : vector<64x128xf32> to vector<8x8x128xf32>
    %32 = vector.shape_cast %29 : vector<8x128xf32> to vector<8x1x128xf32>
    %33 = vector.broadcast %32 : vector<8x1x128xf32> to vector<8x8x128xf32>
    %34 = arith.mulf %33, %31 : vector<8x8x128xf32>
    %cst_22 = arith.constant dense<0.000000e+00> : vector<8x8xf32>
    %35 = vector.multi_reduction <add>, %34, %cst_22 [2] : vector<8x8x128xf32> to vector<8x8xf32>
    %36 = arith.mulf %29, %29 : vector<8x128xf32>
    %cst_23 = arith.constant dense<0.000000e+00> : vector<8xf32>
    %37 = vector.multi_reduction <add>, %36, %cst_23 [1] : vector<8x128xf32> to vector<8xf32>
    %38 = vector.shape_cast %37 : vector<8xf32> to vector<8x1xf32>
    %39 = arith.mulf %31, %31 : vector<8x8x128xf32>
    %cst_24 = arith.constant dense<0.000000e+00> : vector<8x8xf32>
    %40 = vector.multi_reduction <add>, %39, %cst_24 [2] : vector<8x8x128xf32> to vector<8x8xf32>
    %41 = vector.broadcast %38 : vector<8x1xf32> to vector<8x8xf32>
    %42 = arith.mulf %41, %40 : vector<8x8xf32>
    %43 = math.rsqrt %42 : vector<8x8xf32>
    %44 = arith.mulf %35, %43 : vector<8x8xf32>
    %cst_25 = arith.constant 0.000000e+00 : f32
    %45 = vector.broadcast %cst_25 : f32 to vector<8x128xf32>
    %c0_26 = arith.constant 0 : index
    %c0_27 = arith.constant 0 : index
    %46 = vector.load %arg9[%c0_26, %c0_27] : memref<8x128xf32, #tpu.memory_space<vmem>>, vector<8x128xf32>
    tpu.vector_store %arg9[%c0_26, %c0_27], %45 {strides = array<i32>} : memref<8x128xf32, #tpu.memory_space<vmem>>, vector<8x128xf32>,
    %c0_28 = arith.constant 0 : index
    %c0_29 = arith.constant 0 : index
    %47 = vector.load %arg9[%c0_28, %c0_29] : memref<8x128xf32, #tpu.memory_space<vmem>>, vector<8x8xf32>
    tpu.vector_store %arg9[%c0_28, %c0_29], %44 {strides = array<i32>} : memref<8x128xf32, #tpu.memory_space<vmem>>, vector<8x8xf32>,
    return
  }
  func.func @transform_0(%arg0: i32) -> (i32, i32, i32) {
    %c0_i32 = arith.constant 0 : i32
    %c0_i32_0 = arith.constant 0 : i32
    %c0_i32_1 = arith.constant 0 : i32
    return %arg0, %c0_i32, %c0_i32_0 : i32, i32, i32
  }
  func.func @transform_1(%arg0: i32) -> (i32, i32) {
    %c0_i32 = arith.constant 0 : i32
    %c0_i32_0 = arith.constant 0 : i32
    return %arg0, %c0_i32 : i32, i32
  }
  func.func @transform_2(%arg0: i32) -> (i32, i32, i32, i32) {
    %c0_i32 = arith.constant 0 : i32
    %c0_i32_0 = arith.constant 0 : i32
    %c0_i32_1 = arith.constant 0 : i32
    %c0_i32_2 = arith.constant 0 : i32
    return %arg0, %c0_i32, %c0_i32_0, %c0_i32_1 : i32, i32, i32, i32
  }
  func.func @transform_3(%arg0: i32) -> (i32, i32, i32) {
    %c0_i32 = arith.constant 0 : i32
    %c0_i32_0 = arith.constant 0 : i32
    %c0_i32_1 = arith.constant 0 : i32
    return %arg0, %c0_i32, %c0_i32_0 : i32, i32, i32
  }
  func.func @transform_4(%arg0: i32) -> (i32, i32) {
    %c0_i32 = arith.constant 0 : i32
    %c0_i32_0 = arith.constant 0 : i32
    %c0_i32_1 = arith.constant 0 : i32
    return %c0_i32, %c0_i32_0 : i32, i32
  }
  func.func @transform_5(%arg0: i32) -> (i32, i32) {
    %c0_i32 = arith.constant 0 : i32
    %c0_i32_0 = arith.constant 0 : i32
    %c0_i32_1 = arith.constant 0 : i32
    return %c0_i32, %c0_i32_0 : i32, i32
  }
  func.func @transform_6(%arg0: i32) -> (i32, i32) {
    %c0_i32 = arith.constant 0 : i32
    %c0_i32_0 = arith.constant 0 : i32
    %c0_i32_1 = arith.constant 0 : i32
    return %c0_i32, %c0_i32_0 : i32, i32
  }
  func.func @transform_7(%arg0: i32) -> (i32, i32) {
    %c0_i32 = arith.constant 0 : i32
    %c0_i32_0 = arith.constant 0 : i32
    %c0_i32_1 = arith.constant 0 : i32
    return %c0_i32, %c0_i32_0 : i32, i32
  }
  func.func @transform_8(%arg0: i32) -> (i32, i32) {
    %c0_i32 = arith.constant 0 : i32
    %c0_i32_0 = arith.constant 0 : i32
    return %arg0, %c0_i32 : i32, i32
  }
}

</mosaic_0001>

<bundles_post_ra>
// kernel: tpu_custom_call.1
= control target key start
LH: loop header
LB: loop body
LE: loop exit
PB: predicated region body
PF: predicated region fallthrough
CT: control target
= control target key end

     0   :  { %13 = vsyncpa [#allocation3], 0  ;;  %s2844_s0 = inlined_call_operand.hbm [shape: f32[8,8,128], index: 0, kind: input, shape index: {}]   ;;  %s2845_s1 = inlined_call_operand.hbm [shape: f32[8,8], index: 1, kind: input, shape index: {}]   ;;  %s2846_s2 = inlined_call_operand.hbm [shape: f32[8,8,8,128], index: 2, kind: input, shape index: {}]   ;;  %s2847_s3 = inlined_call_operand.hbm [shape: f32[8,8,8], index: 3, kind: input, shape index: {}]   ;;  %s2848_s4 = inlined_call_operand.hbm [shape: bf16[128,128], index: 4, kind: input, shape index: {}]   ;;  %s2849_s5 = inlined_call_operand.vmem [shape: f32[1,128], index: 5, kind: input, shape index: {}]   ;;  %s2850_s6 = inlined_call_operand.hbm [shape: bf16[128,128], index: 6, kind: input, shape index: {}]   ;;  %s2851_s7 = inlined_call_operand.vmem [shape: f32[1,128], index: 7, kind: input, shape index: {}]   ;;  %s2852_s8 = inlined_call_operand.hbm [shape: f32[8,128], index: 8, kind: output, shape index: {}]  }
   0x1   :  { %14 = vsyncpa [#allocation6], 0 }
   0x2   :  { %15 = vsyncpa [#allocation9], 0 }
   0x3   :  { %16 = vsyncpa [#allocation12], 0 }
   0x4   :  { %17 = vsyncpa [#allocation4], 0  ;;  %s2376_s27 = smov [#allocation5]   ;;  %s2212_s9 = scalar_lea.hbm %s2845_s1, 128 }
   0x5   :  { %s36_s28 = sshll.u32 %s2376_s27, 4  ;;  %p2213_p0 = scmp.ne.s32.totalorder %s2845_s1, %s2212_s9  ;;  %s37_s28 = int_to_ptr.vmem [resolvable:$true] %s36_s28 }
   0x6   :  { %p2216_p1 = scmp.lt.u32.totalorder %s2212_s9, %s2845_s1 }
   0x8   :  { %p2218_p2 = pnand %p2216_p1, %p2213_p0 }
   0xa   :  { %2221 = shalt.err (!%p2218_p2)
}
   0xb   :  { %s2222_s14 = scalar_lea.vmem %s37_s28, 128  ;;  %p2227_p4 = scmp.lt.s32.totalorder %s37_s28, %s37_s28 }
   0xc   :  { %p2223_p3 = scmp.ne.s32.totalorder %s37_s28, %s2222_s14  ;;  %p2228_p5 = scmp.lt.s32.totalorder %s2222_s14, %s2222_s14 }
   0xe   :  { %p2229_p6 = por %p2228_p5, %p2227_p4 }
  0x10   :  { %p2230_p7 = pnand %p2229_p6, %p2223_p3 }
  0x12   :  { %2233 = shalt.err (!%p2230_p7)
}
  0x13   :  { %39 = dma.hbm_to_vmem [thread:$0]  %s2845_s1, 128, %s37_s28, [#allocation6]  }
  0x14   :  { %s2377_s17 = smov [#allocation8]   ;;  %s2378_s19 = smov [#allocation2]  }
  0x15   :  { %s57_s18 = sshll.u32 %s2377_s17, 4  ;;  %s23_s20 = sshll.u32 %s2378_s19, 4  ;;  %s58_s18 = int_to_ptr.vmem [resolvable:$true] %s57_s18  ;;  %s24_s20 = int_to_ptr.vmem [resolvable:$true] %s23_s20 }
  0x16   :  { %s2234_s23 = scalar_lea.hbm %s2847_s3, 1024 }
  0x17   :  { %p2235_p8 = scmp.ne.s32.totalorder %s2847_s3, %s2234_s23  ;;  %p2238_p9 = scmp.lt.u32.totalorder %s2234_s23, %s2847_s3 }
  0x19   :  { %p2240_p10 = pnand %p2238_p9, %p2235_p8 }
  0x1b   :  { %2243 = shalt.err (!%p2240_p10)
}
  0x1c   :  { %s2244_s1 = scalar_lea.vmem %s58_s18, 1024  ;;  %p2249_p12 = scmp.lt.s32.totalorder %s58_s18, %s58_s18 }
  0x1d   :  { %p2245_p11 = scmp.ne.s32.totalorder %s58_s18, %s2244_s1  ;;  %p2250_p13 = scmp.lt.s32.totalorder %s2244_s1, %s2244_s1 }
  0x1f   :  { %p2251_p0 = por %p2250_p13, %p2249_p12 }
  0x21   :  { %p2252_p1 = pnand %p2251_p0, %p2245_p11 }
  0x23   :  { %2255 = shalt.err (!%p2252_p1)
}
  0x24   :  { %s2379_s28 = smov 128   ;;  %s2380_s29 = smov 8  }
  0x25   :  { %63 = dma.hbm_to_vmem [thread:$0]  %s2847_s3, 1024, %s58_s18, [#allocation9], %s2379_s28, %s2379_s28, %s2380_s29  }
  0x26   :  { %s2256_s12 = scalar_lea.hbm %s2844_s0, 1024 }
  0x27   :  { %p2257_p2 = scmp.ne.s32.totalorder %s2844_s0, %s2256_s12  ;;  %p2260_p3 = scmp.lt.u32.totalorder %s2256_s12, %s2844_s0 }
  0x29   :  { %p2262_p4 = pnand %p2260_p3, %p2257_p2 }
  0x2b   :  { %2265 = shalt.err (!%p2262_p4)
}
  0x2c   :  { %s2266_s17 = scalar_lea.vmem %s24_s20, 1024  ;;  %p2271_p6 = scmp.lt.s32.totalorder %s24_s20, %s24_s20 }
  0x2d   :  { %p2267_p5 = scmp.ne.s32.totalorder %s24_s20, %s2266_s17  ;;  %p2272_p7 = scmp.lt.s32.totalorder %s2266_s17, %s2266_s17 }
  0x2f   :  { %p2273_p8 = por %p2272_p7, %p2271_p6 }
  0x31   :  { %p2274_p9 = pnand %p2273_p8, %p2267_p5 }
  0x33   :  { %2277 = shalt.err (!%p2274_p9)
}
  0x34   :  { %29 = dma.hbm_to_vmem [thread:$0]  %s2844_s0, 1024, %s24_s20, [#allocation3], %s2379_s28, %s2379_s28, %s2380_s29  }
  0x35   :  { %s2381_s19 = smov [#allocation7]   ;;  %s2382_s22 = smov [#allocation10]  }
  0x36   :  { %s45_s21 = sshll.u32 %s2381_s19, 4  ;;  %s69_s23 = sshll.u32 %s2382_s22, 4  ;;  %s46_s21 = int_to_ptr.vmem [resolvable:$true] %s45_s21  ;;  %s70_s23 = int_to_ptr.vmem [resolvable:$true] %s69_s23 }
  0x37   :  { %s2278_s26 = scalar_lea.hbm %s2846_s2, 8192 }
  0x38   :  { %p2279_p10 = scmp.ne.s32.totalorder %s2846_s2, %s2278_s26  ;;  %p2282_p11 = scmp.lt.u32.totalorder %s2278_s26, %s2846_s2 }
  0x3a   :  { %p2284_p12 = pnand %p2282_p11, %p2279_p10 }
  0x3c   :  { %2287 = shalt.err (!%p2284_p12)
}
  0x3d   :  { %s2288_s0 = scalar_lea.vmem %s46_s21, 8192  ;;  %p2293_p0 = scmp.lt.s32.totalorder %s46_s21, %s46_s21 }
  0x3e   :  { %p2289_p13 = scmp.ne.s32.totalorder %s46_s21, %s2288_s0  ;;  %p2294_p1 = scmp.lt.s32.totalorder %s2288_s0, %s2288_s0 }
  0x40   :  { %p2295_p2 = por %p2294_p1, %p2293_p0 }
  0x42   :  { %p2296_p3 = pnand %p2295_p2, %p2289_p13 }
  0x44   :  { %2299 = shalt.err (!%p2296_p3)
}
  0x45   :  { %51 = dma.hbm_to_vmem [thread:$0]  %s2846_s2, 8192, %s46_s21, [#allocation6], %s2379_s28, %s2379_s28, %s2380_s29  }
  0x46   :  { %s2300_s13 = scalar_lea.hbm %s2848_s4, 1024 }
  0x47   :  { %p2301_p4 = scmp.ne.s32.totalorder %s2848_s4, %s2300_s13  ;;  %p2304_p5 = scmp.lt.u32.totalorder %s2300_s13, %s2848_s4 }
  0x49   :  { %p2306_p6 = pnand %p2304_p5, %p2301_p4 }
  0x4b   :  { %2309 = shalt.err (!%p2306_p6)
}
  0x4c   :  { %s2310_s3 = scalar_lea.vmem %s70_s23, 1024  ;;  %p2315_p8 = scmp.lt.s32.totalorder %s70_s23, %s70_s23 }
  0x4d   :  { %p2311_p7 = scmp.ne.s32.totalorder %s70_s23, %s2310_s3  ;;  %p2316_p9 = scmp.lt.s32.totalorder %s2310_s3, %s2310_s3 }
  0x4f   :  { %p2317_p10 = por %p2316_p9, %p2315_p8 }
  0x51   :  { %p2318_p11 = pnand %p2317_p10, %p2311_p7 }
  0x53   :  { %2321 = shalt.err (!%p2318_p11)
}
  0x54   :  { %s2383_s2 = smov 64   ;;  %s2384_s28 = smov 4  }
  0x55   :  { %75 = dma.hbm_to_vmem [thread:$0]  %s2848_s4, 1024, %s70_s23, [#allocation9], %s2383_s2, %s2383_s2, %s2384_s28  }
  0x56   :  { %s2385_s19 = smov [#allocation11]   ;;  %s2322_s25 = scalar_lea.hbm %s2850_s6, 1024 }
  0x57   :  { %s83_s21 = sshll.u32 %s2385_s19, 4  ;;  %p2323_p12 = scmp.ne.s32.totalorder %s2850_s6, %s2322_s25  ;;  %s84_s21 = int_to_ptr.vmem [resolvable:$true] %s83_s21 }
  0x58   :  { %p2326_p13 = scmp.lt.u32.totalorder %s2322_s25, %s2850_s6 }
  0x5a   :  { %p2328_p0 = pnand %p2326_p13, %p2323_p12 }
  0x5c   :  { %2331 = shalt.err (!%p2328_p0)
}
  0x5d   :  { %s2332_s9 = scalar_lea.vmem %s84_s21, 1024  ;;  %p2337_p2 = scmp.lt.s32.totalorder %s84_s21, %s84_s21 }
  0x5e   :  { %p2333_p1 = scmp.ne.s32.totalorder %s84_s21, %s2332_s9  ;;  %p2338_p3 = scmp.lt.s32.totalorder %s2332_s9, %s2332_s9 }
  0x60   :  { %p2339_p4 = por %p2338_p3, %p2337_p2 }
  0x62   :  { %p2340_p5 = pnand %p2339_p4, %p2333_p1 }
  0x64   :  { %2343 = shalt.err (!%p2340_p5)
}
  0x65   :  { %89 = dma.hbm_to_vmem [thread:$0]  %s2850_s6, 1024, %s84_s21, [#allocation12], %s2383_s2, %s2383_s2, %s2384_s28  }
  0x66   :  { %2366 = dma.done.wait [#allocation3], 1024  }
  0x67   :  { %2367 = vsyncadd [#allocation3], 4294966272 }
  0x68   :  { %2368 = dma.done.wait [#allocation6], 8320  }
  0x69   :  { %2369 = vsyncadd [#allocation6], 4294958976 }
  0x6a   :  { %2370 = dma.done.wait [#allocation9], 2048  }
  0x6b   :  { %2371 = vsyncadd [#allocation9], 4294965248 }
  0x6c   :  { %2372 = dma.done.wait [#allocation12], 1024  }
  0x6d   :  { %2373 = vsyncadd [#allocation12], 4294966272  ;;  %v120_v0 = vlaneseq  ;;  %v296_v4 = vld [vmem:[#allocation8] sm:$0xff]  ;;  %v119_v5 = vld [vmem:[#allocation5] sm:$0xff]  ;;  %v2386_v15 = vmov 0.0   ;;  %vm2387_vm0 = vmmov 0  }
  0x6e   :  { %v2157_v11 = vld [vmem:[#allocation10] sm:$0xff]   ;;  %2068 = vmatprep.subr.bf16.mxu0 %v2386_v15  ;;  %1931 = vst [vmem:[#allocation13] sm:$0xff] %v2386_v15  ;;  %v2158_v16 = vld [vmem:[#allocation10 + $0x8] sm:$0xff]   ;;  %v2159_v20 = vld [vmem:[#allocation10 + $0x10] sm:$0xff]   ;;  %2104 = vmatprep.subr.bf16.mxu1 %v2386_v15  ;;  %vm1208_vm1 = vcmask 1041409   ;;  %vm1210_vm2 = vcmask 1042434  }
  0x6f   :  { %v2518_v1 = vshrl.u32 %v120_v0, 7  ;;  %2069 = vmatpush3.bf16.msra.mxu0 %v2157_v11  ;;  %v2160_v24 = vld [vmem:[#allocation10 + $0x18] sm:$0xff]   ;;  %v2161_v28 = vld [vmem:[#allocation10 + $0x20] sm:$0xff]   ;;  %v2162_v32 = vld [vmem:[#allocation10 + $0x28] sm:$0xff]   ;;  %2084 = vmatprep.mubr.msk.bf16.mxu0 %vm2387_vm0, %v2386_v15  ;;  %vm1212_vm3 = vcmask 1043459   ;;  %vm1214_vm4 = vcmask 1044484  }
  0x70   :  { %2070 = vmatprep.subr.bf16.mxu0 %v2386_v15  ;;  %v297_v35 = vld [vmem:[#allocation8 + $0x8] sm:$0xff]  ;;  %v2163_v36 = vld [vmem:[#allocation10 + $0x30] sm:$0xff]   ;;  %v2164_v40 = vld [vmem:[#allocation10 + $0x38] sm:$0xff]   ;;  %2120 = vmatprep.mubr.msk.bf16.mxu1 %vm2387_vm0, %v2386_v15  ;;  %vm1216_vm5 = vcmask 1045509   ;;  %vm1218_vm6 = vcmask 1046534   ;;  %vm1220_vm7 = vcmask 1047559  }
  0x71   :  { %v2521_v2 = vsub.s32 0, %v2518_v1  ;;  %v2524_v3 = vsub.s32 1, %v2518_v1  ;;  %v2531_v10 = vsub.s32 2, %v2518_v1  ;;  %v2536_v14 = vsub.s32 3, %v2518_v1  ;;  %v298_v39 = vld [vmem:[#allocation8 + $0x10] sm:$0xff]  ;;  %v299_v55 = vld [vmem:[#allocation8 + $0x18] sm:$0xff] }
  0x72   :  { %v2544_v19 = vsub.s32 4, %v2518_v1  ;;  %v2551_v23 = vsub.s32 5, %v2518_v1  ;;  %v2557_v27 = vsub.s32 6, %v2518_v1  ;;  %v2563_v31 = vsub.s32 7, %v2518_v1  ;;  %v300_v58 = vld [vmem:[#allocation8 + $0x20] sm:$0xff] }
  0x73   :  { %v307_v6 = vrot.slane %v296_v4, %v2521_v2  ;;  %v123_v7 = vrot.slane %v119_v5, %v2521_v2  ;;  %v314_v8 = vrot.slane %v296_v4, %v2524_v3  ;;  %v130_v9 = vrot.slane %v119_v5, %v2524_v3  ;;  %2071 = vmatpush3.bf16.msra.mxu0 %v2158_v16  ;;  %v2606_v16 = vld [vmem:[#allocation8 + $0x28] sm:$0xff] }
  0x74   :  { %v321_v12 = vrot.slane %v296_v4, %v2531_v10  ;;  %v137_v13 = vrot.slane %v119_v5, %v2531_v10  ;;  %v328_v17 = vrot.slane %v296_v4, %v2536_v14  ;;  %v144_v18 = vrot.slane %v119_v5, %v2536_v14  ;;  %2072 = vmatprep.subr.bf16.mxu0 %v2386_v15 }
  0x75   :  { %309 = vbcast.lane.b32.xlu1 %v307_v6, 256  ;;  %125 = vbcast.lane.b32.xlu0 %v123_v7, 256  ;;  %v335_v21 = vrot.slane %v296_v4, %v2544_v19  ;;  %v151_v22 = vrot.slane %v119_v5, %v2544_v19  ;;  %v342_v25 = vrot.slane %v296_v4, %v2551_v23  ;;  %vm2004_vm8 = vcmask 64512  }
  0x76   :  { %v158_v26 = vrot.slane %v119_v5, %v2551_v23  ;;  %v349_v29 = vrot.slane %v296_v4, %v2557_v27  ;;  %v165_v30 = vrot.slane %v119_v5, %v2557_v27  ;;  %v356_v33 = vrot.slane %v296_v4, %v2563_v31 }
  0x77   :  { %2073 = vmatpush3.bf16.msra.mxu0 %v2159_v20  ;;  %v172_v34 = vrot.slane %v119_v5, %v2563_v31  ;;  %v370_v37 = vrot.slane %v297_v35, %v2524_v3  ;;  %v363_v38 = vrot.slane %v297_v35, %v2521_v2  ;;  %v426_v41 = vrot.slane %v298_v39, %v2524_v3  ;;  %v2612_v20 = vld [vmem:[#allocation8 + $0x30] sm:$0xff] }
  0x78   :  { %2074 = vmatprep.subr.bf16.mxu0 %v2386_v15  ;;  %v419_v42 = vrot.slane %v298_v39, %v2521_v2  ;;  %v433_v43 = vrot.slane %v298_v39, %v2531_v10  ;;  %v377_v44 = vrot.slane %v297_v35, %v2531_v10  ;;  %v440_v45 = vrot.slane %v298_v39, %v2536_v14 }
  0x79   :  { %316 = vbcast.lane.b32.xlu1 %v314_v8, 256  ;;  %132 = vbcast.lane.b32.xlu0 %v130_v9, 256  ;;  %v384_v46 = vrot.slane %v297_v35, %v2536_v14  ;;  %v447_v47 = vrot.slane %v298_v39, %v2544_v19  ;;  %v391_v48 = vrot.slane %v297_v35, %v2544_v19 }
  0x7a   :  { %v454_v49 = vrot.slane %v298_v39, %v2551_v23  ;;  %v398_v50 = vrot.slane %v297_v35, %v2551_v23  ;;  %v461_v51 = vrot.slane %v298_v39, %v2557_v27  ;;  %v405_v52 = vrot.slane %v297_v35, %v2557_v27 }
  0x7b   :  { %2075 = vmatpush3.bf16.msra.mxu0 %v2160_v24  ;;  %v468_v53 = vrot.slane %v298_v39, %v2563_v31  ;;  %v412_v54 = vrot.slane %v297_v35, %v2563_v31  ;;  %v482_v56 = vrot.slane %v299_v55, %v2524_v3  ;;  %v475_v57 = vrot.slane %v299_v55, %v2521_v2 }
  0x7c   :  { %2076 = vmatprep.subr.bf16.mxu0 %v2386_v15  ;;  %v538_v59 = vrot.slane %v300_v58, %v2524_v3  ;;  %v531_v60 = vrot.slane %v300_v58, %v2521_v2  ;;  %v545_v61 = vrot.slane %v300_v58, %v2531_v10  ;;  %v489_v62 = vrot.slane %v299_v55, %v2531_v10 }
  0x7d   :  { %323 = vbcast.lane.b32.xlu1 %v321_v12, 256  ;;  %139 = vbcast.lane.b32.xlu0 %v137_v13, 256  ;;  %v552_v63 = vrot.slane %v300_v58, %v2536_v14  ;;  %v496_v4 = vrot.slane %v299_v55, %v2536_v14  ;;  %v559_v5 = vrot.slane %v300_v58, %v2544_v19 }
  0x7e   :  { %v503_v6 = vrot.slane %v299_v55, %v2544_v19  ;;  %v566_v7 = vrot.slane %v300_v58, %v2551_v23  ;;  %v510_v8 = vrot.slane %v299_v55, %v2551_v23  ;;  %v573_v9 = vrot.slane %v300_v58, %v2557_v27 }
  0x7f   :  { %2077 = vmatpush3.bf16.msra.mxu0 %v2161_v28  ;;  %v517_v11 = vrot.slane %v299_v55, %v2557_v27  ;;  %v580_v12 = vrot.slane %v300_v58, %v2563_v31  ;;  %v524_v13 = vrot.slane %v299_v55, %v2563_v31  ;;  %v657_v24 = vrot.slane %v2612_v20, %v2531_v10 }
  0x80   :  { %2078 = vmatprep.subr.bf16.mxu0 %v2386_v15  ;;  %v608_v28 = vrot.slane %v2606_v16, %v2536_v14  ;;  %v622_v35 = vrot.slane %v2606_v16, %v2551_v23 }
  0x81   :  { %330 = vbcast.lane.b32.xlu1 %v328_v17, 256  ;;  %146 = vbcast.lane.b32.xlu0 %v144_v18, 256  ;;  %v594_v17 = vrot.slane %v2606_v16, %v2524_v3  ;;  %v587_v18 = vrot.slane %v2606_v16, %v2521_v2 }
  0x83   :  { %2079 = vmatpush3.bf16.msra.mxu0 %v2162_v32  ;;  %v232_v32 = vld [vmem:[#allocation7] sm:$0xff] }
  0x84   :  { %2080 = vmatprep.subr.bf16.mxu0 %v2386_v15 }
  0x85   :  { %337 = vbcast.lane.b32.xlu1 %v335_v21, 256  ;;  %153 = vbcast.lane.b32.xlu0 %v151_v22, 256  ;;  %v650_v21 = vrot.slane %v2612_v20, %v2524_v3  ;;  %v643_v22 = vrot.slane %v2612_v20, %v2521_v2 }
  0x87   :  { %2081 = vmatpush3.bf16.msra.mxu0 %v2163_v36 }
  0x88   :  { %2082 = vmatprep.subr.bf16.mxu0 %v2386_v15 }
  0x89   :  { %344 = vbcast.lane.b32.xlu1 %v342_v25, 256  ;;  %160 = vbcast.lane.b32.xlu0 %v158_v26, 256  ;;  %v601_v25 = vrot.slane %v2606_v16, %v2531_v10  ;;  %v664_v26 = vrot.slane %v2612_v20, %v2536_v14 }
  0x8b   :  { %2083 = vmatpush3.bf16.msra.mxu0 %v2164_v40  ;;  %v233_v40 = vld [vmem:[#allocation7 + $0x8] sm:$0xff] }
  0x8d   :  { %351 = vbcast.lane.b32.xlu1 %v349_v29, 256  ;;  %167 = vbcast.lane.b32.xlu0 %v165_v30, 256  ;;  %v671_v29 = vrot.slane %v2612_v20, %v2544_v19  ;;  %v615_v30 = vrot.slane %v2606_v16, %v2544_v19 }
  0x91   :  { %358 = vbcast.lane.b32.xlu1 %v356_v33, 256  ;;  %174 = vbcast.lane.b32.xlu0 %v172_v34, 256  ;;  %v111_v33 = vld [vmem:[#allocation2] sm:$0xff]  ;;  %v678_v34 = vrot.slane %v2612_v20, %v2551_v23 }
  0x95   :  { %372 = vbcast.lane.b32.xlu1 %v370_v37, 256  ;;  %365 = vbcast.lane.b32.xlu0 %v363_v38, 256 }
  0x99   :  { %428 = vbcast.lane.b32.xlu1 %v426_v41, 256  ;;  %421 = vbcast.lane.b32.xlu0 %v419_v42, 256  ;;  %v112_v41 = vld [vmem:[#allocation2 + $0x8] sm:$0xff]  ;;  %v685_v42 = vrot.slane %v2612_v20, %v2557_v27 }
  0x9d   :  { %435 = vbcast.lane.b32.xlu1 %v433_v43, 256  ;;  %379 = vbcast.lane.b32.xlu0 %v377_v44, 256  ;;  %v629_v43 = vrot.slane %v2606_v16, %v2557_v27 }
  0xa1   :  { %442 = vbcast.lane.b32.xlu1 %v440_v45, 256  ;;  %386 = vbcast.lane.b32.xlu0 %v384_v46, 256 }
  0xa5   :  { %449 = vbcast.lane.b32.xlu1 %v447_v47, 256  ;;  %393 = vbcast.lane.b32.xlu0 %v391_v48, 256 }
  0xa9   :  { %456 = vbcast.lane.b32.xlu1 %v454_v49, 256  ;;  %400 = vbcast.lane.b32.xlu0 %v398_v50, 256 }
  0xad   :  { %463 = vbcast.lane.b32.xlu1 %v461_v51, 256  ;;  %407 = vbcast.lane.b32.xlu0 %v405_v52, 256  ;;  %v2638_v52 = vld [vmem:[#allocation8 + $0x38] sm:$0xff] }
  0xb1   :  { %470 = vbcast.lane.b32.xlu1 %v468_v53, 256  ;;  %414 = vbcast.lane.b32.xlu0 %v412_v54, 256  ;;  %v692_v53 = vrot.slane %v2612_v20, %v2563_v31  ;;  %v636_v54 = vrot.slane %v2606_v16, %v2563_v31 }
  0xb5   :  { %484 = vbcast.lane.b32.xlu1 %v482_v56, 256  ;;  %477 = vbcast.lane.b32.xlu0 %v475_v57, 256 }
  0xb9   :  { %540 = vbcast.lane.b32.xlu1 %v538_v59, 256  ;;  %533 = vbcast.lane.b32.xlu0 %v531_v60, 256  ;;  %v234_v59 = vld [vmem:[#allocation7 + $0x10] sm:$0xff]  ;;  %v113_v60 = vld [vmem:[#allocation2 + $0x10] sm:$0xff] }
  0xbd   :  { %547 = vbcast.lane.b32.xlu1 %v545_v61, 256  ;;  %491 = vbcast.lane.b32.xlu0 %v489_v62, 256 }
  0xc1   :  { %554 = vbcast.lane.b32.xlu1 %v552_v63, 256  ;;  %498 = vbcast.lane.b32.xlu0 %v496_v4, 256  ;;  %v706_v63 = vrot.slane %v2638_v52, %v2524_v3  ;;  %v699_v4 = vrot.slane %v2638_v52, %v2521_v2 }
  0xc5   :  { %561 = vbcast.lane.b32.xlu1 %v559_v5, 256  ;;  %505 = vbcast.lane.b32.xlu0 %v503_v6, 256  ;;  %v720_v5 = vrot.slane %v2638_v52, %v2536_v14 }
  0xc9   :  { %568 = vbcast.lane.b32.xlu1 %v566_v7, 256  ;;  %512 = vbcast.lane.b32.xlu0 %v510_v8, 256 }
  0xcd   :  { %575 = vbcast.lane.b32.xlu1 %v573_v9, 256  ;;  %519 = vbcast.lane.b32.xlu0 %v517_v11, 256 }
  0xd1   :  { %582 = vbcast.lane.b32.xlu1 %v580_v12, 256  ;;  %526 = vbcast.lane.b32.xlu0 %v524_v13, 256  ;;  %v713_v13 = vrot.slane %v2638_v52, %v2531_v10 }
  0xd5   :  { %596 = vbcast.lane.b32.xlu1 %v594_v17, 256  ;;  %589 = vbcast.lane.b32.xlu0 %v587_v18, 256 }
  0xd9   :  { %652 = vbcast.lane.b32.xlu1 %v650_v21, 256  ;;  %645 = vbcast.lane.b32.xlu0 %v643_v22, 256  ;;  %v235_v21 = vld [vmem:[#allocation7 + $0x18] sm:$0xff]  ;;  %v114_v22 = vld [vmem:[#allocation2 + $0x18] sm:$0xff] }
  0xdd   :  { %659 = vbcast.lane.b32.xlu1 %v657_v24, 256  ;;  %603 = vbcast.lane.b32.xlu0 %v601_v25, 256 }
  0xe1   :  { %666 = vbcast.lane.b32.xlu1 %v664_v26, 256  ;;  %610 = vbcast.lane.b32.xlu0 %v608_v28, 256 }
  0xe5   :  { %673 = vbcast.lane.b32.xlu1 %v671_v29, 256  ;;  %617 = vbcast.lane.b32.xlu0 %v615_v30, 256  ;;  %v734_v29 = vrot.slane %v2638_v52, %v2551_v23  ;;  %v727_v30 = vrot.slane %v2638_v52, %v2544_v19 }
  0xe7   :  { %v310_v36 = vpop.permute.xlu1 %309  ;;  %v126_v37 = vpop.permute.xlu0 %125 }
  0xe8   :  { %v752_v38 = vmul.f32 %v310_v36, %v232_v32  ;;  %v176_v39 = vmul.f32 %v126_v37, %v111_v33 }
  0xe9   :  { %680 = vbcast.lane.b32.xlu1 %v678_v34, 256  ;;  %624 = vbcast.lane.b32.xlu0 %v622_v35, 256  ;;  %v748_v34 = vrot.slane %v2638_v52, %v2563_v31  ;;  %v741_v35 = vrot.slane %v2638_v52, %v2557_v27  ;;  %v241_v52 = vld [vmem:[#allocation7 + $0x48] sm:$0xff] }
  0xea   :  { %v816_v44 = vrot.slane %v752_v38, 4  ;;  %v184_v45 = vrot.slane %v176_v39, 4 }
  0xeb   :  { %v317_v46 = vpop.permute.xlu1 %316  ;;  %v133_v47 = vpop.permute.xlu0 %132 }
  0xec   :  { %v817_v48 = vadd.f32 %v816_v44, %v752_v38  ;;  %v185_v49 = vadd.f32 %v184_v45, %v176_v39  ;;  %v753_v50 = vmul.f32 %v317_v46, %v233_v40  ;;  %v177_v51 = vmul.f32 %v133_v47, %v112_v41  ;;  %v236_v40 = vld [vmem:[#allocation7 + $0x20] sm:$0xff]  ;;  %v115_v41 = vld [vmem:[#allocation2 + $0x20] sm:$0xff] }
  0xed   :  { %687 = vbcast.lane.b32.xlu1 %v685_v42, 256  ;;  %631 = vbcast.lane.b32.xlu0 %v629_v43, 256 }
  0xee   :  { %v818_v55 = vrot.slane %v817_v48, 2  ;;  %v186_v56 = vrot.slane %v185_v49, 2  ;;  %v822_v57 = vrot.slane %v753_v50, 4  ;;  %v190_v58 = vrot.slane %v177_v51, 4 }
  0xef   :  { %v324_v61 = vpop.permute.xlu1 %323  ;;  %v140_v62 = vpop.permute.xlu0 %139 }
  0xf0   :  { %v819_v6 = vadd.f32 %v818_v55, %v817_v48  ;;  %v187_v7 = vadd.f32 %v186_v56, %v185_v49  ;;  %v823_v8 = vadd.f32 %v822_v57, %v753_v50  ;;  %v191_v9 = vadd.f32 %v190_v58, %v177_v51 }
  0xf1   :  { %v754_v11 = vmul.f32 %v324_v61, %v234_v59  ;;  %v178_v12 = vmul.f32 %v140_v62, %v113_v60  ;;  %694 = vbcast.lane.b32.xlu1 %v692_v53, 256  ;;  %638 = vbcast.lane.b32.xlu0 %v636_v54, 256  ;;  %v237_v61 = vld [vmem:[#allocation7 + $0x28] sm:$0xff]  ;;  %v116_v62 = vld [vmem:[#allocation2 + $0x28] sm:$0xff] }
  0xf2   :  { %v820_v16 = vrot.slane %v819_v6, 1  ;;  %v188_v17 = vrot.slane %v187_v7, 1  ;;  %v824_v18 = vrot.slane %v823_v8, 2  ;;  %v192_v20 = vrot.slane %v191_v9, 2 }
  0xf3   :  { %v828_v24 = vrot.slane %v754_v11, 4  ;;  %v196_v25 = vrot.slane %v178_v12, 4  ;;  %v331_v26 = vpop.permute.xlu1 %330  ;;  %v147_v28 = vpop.permute.xlu0 %146 }
  0xf4   :  { %v825_v32 = vadd.f32 %v824_v18, %v823_v8  ;;  %v193_v33 = vadd.f32 %v192_v20, %v191_v9  ;;  %v755_v38 = vmul.f32 %v331_v26, %v235_v21  ;;  %v179_v39 = vmul.f32 %v147_v28, %v114_v22  ;;  %v238_v28 = vld [vmem:[#allocation7 + $0x30] sm:$0xff] }
  0xf5   :  { %v829_v36 = vadd.f32 %v828_v24, %v754_v11  ;;  %v197_v37 = vadd.f32 %v196_v25, %v178_v12  ;;  %708 = vbcast.lane.b32.xlu1 %v706_v63, 256  ;;  %v821_v42 = vadd.f32 %v820_v16, %v819_v6  ;;  %v189_v43 = vadd.f32 %v188_v17, %v187_v7 }
  0xf6   :  { %v826_v44 = vrot.slane %v825_v32, 1  ;;  %v194_v45 = vrot.slane %v193_v33, 1  ;;  %701 = vbcast.lane.b32.xlu0 %v699_v4, 256  ;;  %v834_v48 = vrot.slane %v755_v38, 4  ;;  %v202_v49 = vrot.slane %v179_v39, 4 }
  0xf7   :  { %v830_v46 = vrot.slane %v829_v36, 2  ;;  %v198_v47 = vrot.slane %v197_v37, 2  ;;  %v338_v50 = vpop.permute.xlu1 %337  ;;  %v154_v51 = vpop.permute.xlu0 %153 }
  0xf8   :  { %v827_v53 = vadd.f32 %v826_v44, %v825_v32  ;;  %v195_v54 = vadd.f32 %v194_v45, %v193_v33  ;;  %v756_v55 = vmul.f32 %v338_v50, %v236_v40  ;;  %v180_v56 = vmul.f32 %v154_v51, %v115_v41 }
  0xf9   :  { %v831_v57 = vadd.f32 %v830_v46, %v829_v36  ;;  %v199_v58 = vadd.f32 %v198_v47, %v197_v37  ;;  %v835_v59 = vadd.f32 %v834_v48, %v755_v38  ;;  %v203_v60 = vadd.f32 %v202_v49, %v179_v39  ;;  %722 = vbcast.lane.b32.xlu1 %v720_v5, 256  ;;  %v117_v37 = vld [vmem:[#allocation2 + $0x30] sm:$0xff] }
  0xfa   :  { %v1287_v63 = vsel %vm1208_vm1, %v827_v53, %v821_v42  ;;  %v1209_v4 = vsel %vm1208_vm1, %v195_v54, %v189_v43  ;;  %v840_v6 = vrot.slane %v756_v55, 4  ;;  %v208_v7 = vrot.slane %v180_v56, 4  ;;  %715 = vbcast.lane.b32.xlu0 %v713_v13, 256 }
  0xfb   :  { %v832_v8 = vrot.slane %v831_v57, 1  ;;  %v200_v9 = vrot.slane %v199_v58, 1  ;;  %v836_v11 = vrot.slane %v835_v59, 2  ;;  %v204_v12 = vrot.slane %v203_v60, 2  ;;  %v345_v16 = vpop.permute.xlu1 %344  ;;  %v161_v17 = vpop.permute.xlu0 %160 }
  0xfc   :  { %v841_v18 = vadd.f32 %v840_v6, %v756_v55  ;;  %v209_v20 = vadd.f32 %v208_v7, %v180_v56  ;;  %v757_v21 = vmul.f32 %v345_v16, %v237_v61  ;;  %v181_v5 = vmul.f32 %v161_v17, %v116_v62  ;;  %v118_v56 = vld [vmem:[#allocation2 + $0x38] sm:$0xff] }
  0xfd   :  { %v833_v22 = vadd.f32 %v832_v8, %v831_v57  ;;  %v201_v24 = vadd.f32 %v200_v9, %v199_v58  ;;  %v837_v25 = vadd.f32 %v836_v11, %v835_v59  ;;  %v205_v26 = vadd.f32 %v204_v12, %v203_v60  ;;  %736 = vbcast.lane.b32.xlu1 %v734_v29, 256 }
  0xfe   :  { %v842_v32 = vrot.slane %v841_v18, 2  ;;  %v210_v33 = vrot.slane %v209_v20, 2  ;;  %v846_v13 = vrot.slane %v757_v21, 4  ;;  %v214_v36 = vrot.slane %v181_v5, 4  ;;  %729 = vbcast.lane.b32.xlu0 %v727_v30, 256  ;;  %v239_v30 = vld [vmem:[#allocation7 + $0x38] sm:$0xff] }
  0xff   :  { %v1288_v38 = vsel %vm1210_vm2, %v833_v22, %v1287_v63  ;;  %v1211_v39 = vsel %vm1210_vm2, %v201_v24, %v1209_v4  ;;  %v838_v40 = vrot.slane %v837_v25, 1  ;;  %v206_v41 = vrot.slane %v205_v26, 1  ;;  %v352_v42 = vpop.permute.xlu1 %351  ;;  %v168_v43 = vpop.permute.xlu0 %167 }
 0x100   :  { %v843_v44 = vadd.f32 %v842_v32, %v841_v18  ;;  %v211_v45 = vadd.f32 %v210_v33, %v209_v20  ;;  %v847_v46 = vadd.f32 %v846_v13, %v757_v21  ;;  %v215_v29 = vadd.f32 %v214_v36, %v181_v5 }
 0x101   :  { %v839_v47 = vadd.f32 %v838_v40, %v837_v25  ;;  %v207_v48 = vadd.f32 %v206_v41, %v205_v26  ;;  %v758_v49 = vmul.f32 %v352_v42, %v238_v28  ;;  %v182_v50 = vmul.f32 %v168_v43, %v117_v37  ;;  %750 = vbcast.lane.b32.xlu1 %v748_v34, 256  ;;  %v2165_v26 = vld [vmem:[#allocation11] sm:$0xff]   ;;  %v249_v40 = vld [vmem:[#allocation7 + $0x88] sm:$0xff] }
 0x102   :  { %v844_v51 = vrot.slane %v843_v44, 1  ;;  %v212_v53 = vrot.slane %v211_v45, 1  ;;  %v848_v54 = vrot.slane %v847_v46, 2  ;;  %v216_v55 = vrot.slane %v215_v29, 2  ;;  %743 = vbcast.lane.b32.xlu0 %v741_v35, 256  ;;  %v240_v35 = vld [vmem:[#allocation7 + $0x40] sm:$0xff]  ;;  %2105 = vmatpush3.bf16.msra.mxu1 %v2165_v26 }
 0x103   :  { %v1289_v57 = vsel %vm1212_vm3, %v839_v47, %v1288_v38  ;;  %v1213_v58 = vsel %vm1212_vm3, %v207_v48, %v1211_v39  ;;  %v852_v59 = vrot.slane %v758_v49, 4  ;;  %v220_v60 = vrot.slane %v182_v50, 4  ;;  %v359_v61 = vpop.permute.xlu1 %358  ;;  %v175_v62 = vpop.permute.xlu0 %174  ;;  %v248_v41 = vld [vmem:[#allocation7 + $0x80] sm:$0xff]  ;;  %v2166_v42 = vld [vmem:[#allocation11 + $0x8] sm:$0xff]   ;;  %2106 = vmatprep.subr.bf16.mxu1 %v2386_v15 }
 0x104   :  { %v845_v63 = vadd.f32 %v844_v51, %v843_v44  ;;  %v213_v34 = vadd.f32 %v212_v53, %v211_v45  ;;  %v849_v4 = vadd.f32 %v848_v54, %v847_v46  ;;  %v217_v6 = vadd.f32 %v216_v55, %v215_v29 }
 0x105   :  { %v853_v7 = vadd.f32 %v852_v59, %v758_v49  ;;  %v221_v8 = vadd.f32 %v220_v60, %v182_v50  ;;  %v759_v9 = vmul.f32 %v359_v61, %v239_v30  ;;  %v183_v11 = vmul.f32 %v175_v62, %v118_v56  ;;  %v2167_v60 = vld [vmem:[#allocation11 + $0x10] sm:$0xff]  }
 0x106   :  { %v1290_v12 = vsel %vm1214_vm4, %v845_v63, %v1289_v57  ;;  %v1215_v16 = vsel %vm1214_vm4, %v213_v34, %v1213_v58  ;;  %v850_v17 = vrot.slane %v849_v4, 1  ;;  %v218_v18 = vrot.slane %v217_v6, 1  ;;  %2107 = vmatpush3.bf16.msra.mxu1 %v2166_v42 }
 0x107   :  { %v854_v20 = vrot.slane %v853_v7, 2  ;;  %v222_v21 = vrot.slane %v221_v8, 2  ;;  %v858_v5 = vrot.slane %v759_v9, 4  ;;  %v226_v22 = vrot.slane %v183_v11, 4  ;;  %v373_v24 = vpop.permute.xlu1 %372  ;;  %v366_v25 = vpop.permute.xlu0 %365  ;;  %2108 = vmatprep.subr.bf16.mxu1 %v2386_v15 }
 0x108   :  { %v851_v28 = vadd.f32 %v850_v17, %v849_v4  ;;  %v219_v32 = vadd.f32 %v218_v18, %v217_v6  ;;  %v761_v33 = vmul.f32 %v373_v24, %v241_v52  ;;  %v760_v13 = vmul.f32 %v366_v25, %v240_v35  ;;  %v250_v4 = vld [vmem:[#allocation7 + $0x90] sm:$0xff]  ;;  %v2168_v24 = vld [vmem:[#allocation11 + $0x18] sm:$0xff]  }
 0x109   :  { %v855_v36 = vadd.f32 %v854_v20, %v853_v7  ;;  %v223_v37 = vadd.f32 %v222_v21, %v221_v8  ;;  %v859_v38 = vadd.f32 %v858_v5, %v759_v9  ;;  %v227_v39 = vadd.f32 %v226_v22, %v183_v11  ;;  %v242_v6 = vld [vmem:[#allocation7 + $0x50] sm:$0xff] }
 0x10a   :  { %v870_v43 = vrot.slane %v761_v33, 4  ;;  %v864_v44 = vrot.slane %v760_v13, 4  ;;  %v1217_v45 = vsel %vm1216_vm5, %v219_v32, %v1215_v16  ;;  %v1291_v46 = vsel %vm1216_vm5, %v851_v28, %v1290_v12  ;;  %2109 = vmatpush3.bf16.msra.mxu1 %v2167_v60 }
 0x10b   :  { %v856_v29 = vrot.slane %v855_v36, 1  ;;  %v224_v47 = vrot.slane %v223_v37, 1  ;;  %v860_v48 = vrot.slane %v859_v38, 2  ;;  %v228_v49 = vrot.slane %v227_v39, 2  ;;  %v429_v50 = vpop.permute.xlu1 %428  ;;  %v422_v30 = vpop.permute.xlu0 %421  ;;  %2110 = vmatprep.subr.bf16.mxu1 %v2386_v15 }
 0x10c   :  { %v871_v51 = vadd.f32 %v870_v43, %v761_v33  ;;  %v865_v53 = vadd.f32 %v864_v44, %v760_v13  ;;  %v769_v54 = vmul.f32 %v429_v50, %v249_v40  ;;  %v768_v55 = vmul.f32 %v422_v30, %v248_v41  ;;  %v251_v33 = vld [vmem:[#allocation7 + $0x98] sm:$0xff] }
 0x10d   :  { %v857_v56 = vadd.f32 %v856_v29, %v855_v36  ;;  %v225_v57 = vadd.f32 %v224_v47, %v223_v37  ;;  %v861_v58 = vadd.f32 %v860_v48, %v859_v38  ;;  %v229_v59 = vadd.f32 %v228_v49, %v227_v39  ;;  %v243_v13 = vld [vmem:[#allocation7 + $0x58] sm:$0xff]  ;;  %v252_v48 = vld [vmem:[#allocation7 + $0xa0] sm:$0xff] }
 0x10e   :  { %v872_v61 = vrot.slane %v871_v51, 2  ;;  %v866_v62 = vrot.slane %v865_v53, 2  ;;  %v918_v63 = vrot.slane %v769_v54, 4  ;;  %v912_v34 = vrot.slane %v768_v55, 4  ;;  %v244_v49 = vld [vmem:[#allocation7 + $0x60] sm:$0xff]  ;;  %2111 = vmatpush3.bf16.msra.mxu1 %v2168_v24 }
 0x10f   :  { %v862_v7 = vrot.slane %v861_v58, 1  ;;  %v230_v8 = vrot.slane %v229_v59, 1  ;;  %v436_v9 = vpop.permute.xlu1 %435  ;;  %v380_v11 = vpop.permute.xlu0 %379  ;;  %v1219_v52 = vsel %vm1218_vm6, %v225_v57, %v1217_v45  ;;  %v1292_v35 = vsel %vm1218_vm6, %v857_v56, %v1291_v46  ;;  %2112 = vmatprep.subr.bf16.mxu1 %v2386_v15 }
 0x110   :  { %v873_v12 = vadd.f32 %v872_v61, %v871_v51  ;;  %v867_v16 = vadd.f32 %v866_v62, %v865_v53  ;;  %v919_v17 = vadd.f32 %v918_v63, %v769_v54  ;;  %v913_v18 = vadd.f32 %v912_v34, %v768_v55 }
 0x111   :  { %v863_v20 = vadd.f32 %v862_v7, %v861_v58  ;;  %v231_v21 = vadd.f32 %v230_v8, %v229_v59  ;;  %v770_v5 = vmul.f32 %v436_v9, %v250_v4  ;;  %v762_v22 = vmul.f32 %v380_v11, %v242_v6  ;;  %v253_v8 = vld [vmem:[#allocation7 + $0xa8] sm:$0xff] }
 0x112   :  { %v874_v25 = vrot.slane %v873_v12, 1  ;;  %v868_v26 = vrot.slane %v867_v16, 1  ;;  %v920_v28 = vrot.slane %v919_v17, 2  ;;  %v914_v32 = vrot.slane %v913_v18, 2  ;;  %v245_v9 = vld [vmem:[#allocation7 + $0x68] sm:$0xff] }
 0x113   :  { %v924_v36 = vrot.slane %v770_v5, 4  ;;  %v876_v37 = vrot.slane %v762_v22, 4  ;;  %v443_v38 = vpop.permute.xlu1 %442  ;;  %v387_v39 = vpop.permute.xlu0 %386  ;;  %v1221_v40 = vsel %vm1220_vm7, %v231_v21, %v1219_v52  ;;  %v1293_v41 = vsel %vm1220_vm7, %v863_v20, %v1292_v35 }
 0x114   :  { %v875_v42 = vadd.f32 %v874_v25, %v873_v12  ;;  %v921_v43 = vadd.f32 %v920_v28, %v919_v17  ;;  %v915_v44 = vadd.f32 %v914_v32, %v913_v18  ;;  %v771_v29 = vmul.f32 %v443_v38, %v251_v33 }
 0x115   :  { %v925_v45 = vadd.f32 %v924_v36, %v770_v5  ;;  %v877_v46 = vadd.f32 %v876_v37, %v762_v22  ;;  %v763_v47 = vmul.f32 %v387_v39, %v243_v13  ;;  %v869_v50 = vadd.f32 %v868_v26, %v867_v16  ;;  %v254_v39 = vld [vmem:[#allocation7 + $0xb0] sm:$0xff] }
 0x116   :  { %v922_v30 = vrot.slane %v921_v43, 1  ;;  %v916_v51 = vrot.slane %v915_v44, 1  ;;  %v1351_v53 = vpack.c.bf16 %v1293_v41, %v1221_v40  ;;  %v930_v56 = vrot.slane %v771_v29, 4  ;;  %v246_v40 = vld [vmem:[#allocation7 + $0x70] sm:$0xff] }
 0x117   :  { %v926_v54 = vrot.slane %v925_v45, 2  ;;  %v878_v55 = vrot.slane %v877_v46, 2  ;;  %v882_v57 = vrot.slane %v763_v47, 4  ;;  %v450_v58 = vpop.permute.xlu1 %449  ;;  %v394_v59 = vpop.permute.xlu0 %393  ;;  %v1294_v11 = vsel %vm1208_vm1, %v875_v42, %v869_v50 }
 0x118   :  { %v923_v60 = vadd.f32 %v922_v30, %v921_v43  ;;  %v917_v61 = vadd.f32 %v916_v51, %v915_v44  ;;  %2085 = vmatmul.mubr.bf16.vlgmr.msra.gmra.mrb[0].mxu0 %v1351_v53  ;;  %v772_v62 = vmul.f32 %v450_v58, %v252_v48  ;;  %v764_v63 = vmul.f32 %v394_v59, %v244_v49  ;;  %v255_v58 = vld [vmem:[#allocation7 + $0xb8] sm:$0xff] }
 0x119   :  { %v927_v34 = vadd.f32 %v926_v54, %v925_v45  ;;  %v879_v4 = vadd.f32 %v878_v55, %v877_v46  ;;  %v931_v6 = vadd.f32 %v930_v56, %v771_v29  ;;  %v883_v7 = vadd.f32 %v882_v57, %v763_v47  ;;  %2088 = vmatprep.mubr.msk.bf16.mxu0 %vm2387_vm0, %v2386_v15  ;;  %v247_v59 = vld [vmem:[#allocation7 + $0x78] sm:$0xff] }
 0x11a   :  { %v1301_v52 = vsel %vm1208_vm1, %v923_v60, %v917_v61  ;;  %v936_v35 = vrot.slane %v772_v62, 4  ;;  %v888_v12 = vrot.slane %v764_v63, 4 }
 0x11b   :  { %v928_v16 = vrot.slane %v927_v34, 1  ;;  %v880_v17 = vrot.slane %v879_v4, 1  ;;  %v932_v18 = vrot.slane %v931_v6, 2  ;;  %v884_v20 = vrot.slane %v883_v7, 2  ;;  %v457_v21 = vpop.permute.xlu1 %456  ;;  %v401_v5 = vpop.permute.xlu0 %400 }
 0x11c   :  { %v937_v22 = vadd.f32 %v936_v35, %v772_v62  ;;  %v889_v24 = vadd.f32 %v888_v12, %v764_v63  ;;  %v773_v25 = vmul.f32 %v457_v21, %v253_v8  ;;  %v765_v26 = vmul.f32 %v401_v5, %v245_v9 }
 0x11d   :  { %v929_v28 = vadd.f32 %v928_v16, %v927_v34  ;;  %v881_v32 = vadd.f32 %v880_v17, %v879_v4  ;;  %v933_v33 = vadd.f32 %v932_v18, %v931_v6  ;;  %v885_v15 = vadd.f32 %v884_v20, %v883_v7  ;;  %v257_v16 = vld [vmem:[#allocation7 + $0xc8] sm:$0xff]  ;;  %v256_v17 = vld [vmem:[#allocation7 + $0xc0] sm:$0xff] }
 0x11e   :  { %v938_v13 = vrot.slane %v937_v22, 2  ;;  %v890_v36 = vrot.slane %v889_v24, 2  ;;  %v942_v37 = vrot.slane %v773_v25, 4  ;;  %v894_v38 = vrot.slane %v765_v26, 4 }
 0x11f   :  { %v1302_v41 = vsel %vm1210_vm2, %v929_v28, %v1301_v52  ;;  %v1295_v42 = vsel %vm1210_vm2, %v881_v32, %v1294_v11  ;;  %v934_v43 = vrot.slane %v933_v33, 1  ;;  %v886_v44 = vrot.slane %v885_v15, 1  ;;  %v464_v45 = vpop.permute.xlu1 %463  ;;  %v408_v46 = vpop.permute.xlu0 %407 }
 0x120   :  { %v939_v29 = vadd.f32 %v938_v13, %v937_v22  ;;  %v891_v47 = vadd.f32 %v890_v36, %v889_v24  ;;  %v943_v48 = vadd.f32 %v942_v37, %v773_v25  ;;  %v895_v49 = vadd.f32 %v894_v38, %v765_v26 }
 0x121   :  { %v935_v50 = vadd.f32 %v934_v43, %v933_v33  ;;  %v887_v30 = vadd.f32 %v886_v44, %v885_v15  ;;  %v774_v51 = vmul.f32 %v464_v45, %v254_v39  ;;  %v766_v53 = vmul.f32 %v408_v46, %v246_v40 }
 0x122   :  { %v940_v54 = vrot.slane %v939_v29, 1  ;;  %v892_v55 = vrot.slane %v891_v47, 1  ;;  %v944_v56 = vrot.slane %v943_v48, 2  ;;  %v896_v57 = vrot.slane %v895_v49, 2 }
 0x123   :  { %v1303_v60 = vsel %vm1212_vm3, %v935_v50, %v1302_v41  ;;  %v1296_v61 = vsel %vm1212_vm3, %v887_v30, %v1295_v42  ;;  %v948_v62 = vrot.slane %v774_v51, 4  ;;  %v900_v63 = vrot.slane %v766_v53, 4  ;;  %v471_v34 = vpop.permute.xlu1 %470  ;;  %v415_v4 = vpop.permute.xlu0 %414  ;;  %v265_v41 = vld [vmem:[#allocation7 + $0x108] sm:$0xff]  ;;  %v264_v42 = vld [vmem:[#allocation7 + $0x100] sm:$0xff] }
 0x124   :  { %v941_v6 = vadd.f32 %v940_v54, %v939_v29  ;;  %v893_v7 = vadd.f32 %v892_v55, %v891_v47  ;;  %v945_v8 = vadd.f32 %v944_v56, %v943_v48  ;;  %v897_v9 = vadd.f32 %v896_v57, %v895_v49 }
 0x125   :  { %v949_v11 = vadd.f32 %v948_v62, %v774_v51  ;;  %v901_v52 = vadd.f32 %v900_v63, %v766_v53  ;;  %v775_v35 = vmul.f32 %v471_v34, %v255_v58  ;;  %v767_v12 = vmul.f32 %v415_v4, %v247_v59  ;;  %v266_v34 = vld [vmem:[#allocation7 + $0x110] sm:$0xff] }
 0x126   :  { %v1304_v18 = vsel %vm1214_vm4, %v941_v6, %v1303_v60  ;;  %v1297_v20 = vsel %vm1214_vm4, %v893_v7, %v1296_v61  ;;  %v946_v21 = vrot.slane %v945_v8, 1  ;;  %v898_v5 = vrot.slane %v897_v9, 1  ;;  %v258_v4 = vld [vmem:[#allocation7 + $0xd0] sm:$0xff] }
 0x127   :  { %v950_v22 = vrot.slane %v949_v11, 2  ;;  %v902_v24 = vrot.slane %v901_v52, 2  ;;  %v954_v25 = vrot.slane %v775_v35, 4  ;;  %v906_v26 = vrot.slane %v767_v12, 4  ;;  %v485_v28 = vpop.permute.xlu1 %484  ;;  %v478_v32 = vpop.permute.xlu0 %477 }
 0x128   :  { %v947_v33 = vadd.f32 %v946_v21, %v945_v8  ;;  %v899_v15 = vadd.f32 %v898_v5, %v897_v9  ;;  %v777_v13 = vmul.f32 %v485_v28, %v257_v16  ;;  %v776_v36 = vmul.f32 %v478_v32, %v256_v17  ;;  %v267_v28 = vld [vmem:[#allocation7 + $0x118] sm:$0xff] }
 0x129   :  { %v951_v37 = vadd.f32 %v950_v22, %v949_v11  ;;  %v903_v38 = vadd.f32 %v902_v24, %v901_v52  ;;  %v955_v39 = vadd.f32 %v954_v25, %v775_v35  ;;  %v907_v40 = vadd.f32 %v906_v26, %v767_v12  ;;  %v259_v32 = vld [vmem:[#allocation7 + $0xd8] sm:$0xff] }
 0x12a   :  { %v966_v43 = vrot.slane %v777_v13, 4  ;;  %v960_v44 = vrot.slane %v776_v36, 4  ;;  %v1298_v45 = vsel %vm1216_vm5, %v899_v15, %v1297_v20  ;;  %v1305_v46 = vsel %vm1216_vm5, %v947_v33, %v1304_v18 }
 0x12b   :  { %v952_v29 = vrot.slane %v951_v37, 1  ;;  %v904_v47 = vrot.slane %v903_v38, 1  ;;  %v956_v48 = vrot.slane %v955_v39, 2  ;;  %v908_v49 = vrot.slane %v907_v40, 2  ;;  %v541_v50 = vpop.permute.xlu1 %540  ;;  %v534_v30 = vpop.permute.xlu0 %533 }
 0x12c   :  { %v967_v51 = vadd.f32 %v966_v43, %v777_v13  ;;  %v961_v53 = vadd.f32 %v960_v44, %v776_v36  ;;  %v785_v54 = vmul.f32 %v541_v50, %v265_v41  ;;  %v784_v55 = vmul.f32 %v534_v30, %v264_v42 }
 0x12d   :  { %v953_v56 = vadd.f32 %v952_v29, %v951_v37  ;;  %v905_v57 = vadd.f32 %v904_v47, %v903_v38  ;;  %v957_v58 = vadd.f32 %v956_v48, %v955_v39  ;;  %v909_v59 = vadd.f32 %v908_v49, %v907_v40  ;;  %v260_v29 = vld [vmem:[#allocation7 + $0xe0] sm:$0xff] }
 0x12e   :  { %v968_v60 = vrot.slane %v967_v51, 2  ;;  %v962_v61 = vrot.slane %v961_v53, 2  ;;  %v1014_v62 = vrot.slane %v785_v54, 4  ;;  %v1008_v63 = vrot.slane %v784_v55, 4 }
 0x12f   :  { %v958_v6 = vrot.slane %v957_v58, 1  ;;  %v910_v7 = vrot.slane %v909_v59, 1  ;;  %v548_v8 = vpop.permute.xlu1 %547  ;;  %v492_v9 = vpop.permute.xlu0 %491  ;;  %v1299_v11 = vsel %vm1218_vm6, %v905_v57, %v1298_v45  ;;  %v1306_v52 = vsel %vm1218_vm6, %v953_v56, %v1305_v46  ;;  %v268_v46 = vld [vmem:[#allocation7 + $0x120] sm:$0xff] }
 0x130   :  { %v969_v35 = vadd.f32 %v968_v60, %v967_v51  ;;  %v963_v12 = vadd.f32 %v962_v61, %v961_v53  ;;  %v1015_v16 = vadd.f32 %v1014_v62, %v785_v54  ;;  %v1009_v17 = vadd.f32 %v1008_v63, %v784_v55 }
 0x131   :  { %v959_v18 = vadd.f32 %v958_v6, %v957_v58  ;;  %v911_v20 = vadd.f32 %v910_v7, %v909_v59  ;;  %v786_v21 = vmul.f32 %v548_v8, %v266_v34  ;;  %v778_v5 = vmul.f32 %v492_v9, %v258_v4  ;;  %v269_v4 = vld [vmem:[#allocation7 + $0x128] sm:$0xff]  ;;  %v2700_v7 = vld [vmem:[#allocation13] sm:$0xff] }
 0x132   :  { %v970_v22 = vrot.slane %v969_v35, 1  ;;  %v964_v24 = vrot.slane %v963_v12, 1  ;;  %v1016_v25 = vrot.slane %v1015_v16, 2  ;;  %v1010_v26 = vrot.slane %v1009_v17, 2  ;;  %v261_v6 = vld [vmem:[#allocation7 + $0xe8] sm:$0xff] }
 0x133   :  { %v1020_v33 = vrot.slane %v786_v21, 4  ;;  %v972_v15 = vrot.slane %v778_v5, 4  ;;  %v555_v13 = vpop.permute.xlu1 %554  ;;  %v499_v36 = vpop.permute.xlu0 %498  ;;  %v1300_v37 = vsel %vm1220_vm7, %v911_v20, %v1299_v11  ;;  %v1307_v38 = vsel %vm1220_vm7, %v959_v18, %v1306_v52 }
 0x134   :  { %v971_v39 = vadd.f32 %v970_v22, %v969_v35  ;;  %v1017_v40 = vadd.f32 %v1016_v25, %v1015_v16  ;;  %v1011_v41 = vadd.f32 %v1010_v26, %v1009_v17  ;;  %v787_v44 = vmul.f32 %v555_v13, %v267_v28 }
 0x135   :  { %v1021_v42 = vadd.f32 %v1020_v33, %v786_v21  ;;  %v973_v43 = vadd.f32 %v972_v15, %v778_v5  ;;  %v779_v45 = vmul.f32 %v499_v36, %v259_v32  ;;  %v965_v47 = vadd.f32 %v964_v24, %v963_v12 }
 0x136   :  { %v1018_v48 = vrot.slane %v1017_v40, 1  ;;  %v1012_v49 = vrot.slane %v1011_v41, 1  ;;  %v1352_v50 = vpack.c.bf16 %v1307_v38, %v1300_v37  ;;  %v1026_v53 = vrot.slane %v787_v44, 4  ;;  %v270_v37 = vld [vmem:[#allocation7 + $0x130] sm:$0xff] }
 0x137   :  { %v1022_v30 = vrot.slane %v1021_v42, 2  ;;  %v974_v51 = vrot.slane %v973_v43, 2  ;;  %v978_v54 = vrot.slane %v779_v45, 4  ;;  %v562_v55 = vpop.permute.xlu1 %561  ;;  %v506_v56 = vpop.permute.xlu0 %505  ;;  %v1308_v8 = vsel %vm1208_vm1, %v971_v39, %v965_v47  ;;  %v262_v38 = vld [vmem:[#allocation7 + $0xf0] sm:$0xff] }
 0x138   :  { %v1019_v57 = vadd.f32 %v1018_v48, %v1017_v40  ;;  %v1013_v58 = vadd.f32 %v1012_v49, %v1011_v41  ;;  %2089 = vmatmul.mubr.bf16.gmra.mrb[4].mxu0 %v1352_v50  ;;  %v788_v59 = vmul.f32 %v562_v55, %v268_v46  ;;  %v780_v60 = vmul.f32 %v506_v56, %v260_v29  ;;  %v271_v56 = vld [vmem:[#allocation7 + $0x138] sm:$0xff] }
 0x139   :  { %v1023_v61 = vadd.f32 %v1022_v30, %v1021_v42  ;;  %v975_v62 = vadd.f32 %v974_v51, %v973_v43  ;;  %v1027_v63 = vadd.f32 %v1026_v53, %v787_v44  ;;  %v979_v34 = vadd.f32 %v978_v54, %v779_v45  ;;  %2092 = vmatprep.mubr.msk.bf16.mxu0 %vm2387_vm0, %v2700_v7 }
 0x13a   :  { %v1315_v9 = vsel %vm1208_vm1, %v1019_v57, %v1013_v58  ;;  %v1032_v11 = vrot.slane %v788_v59, 4  ;;  %v984_v52 = vrot.slane %v780_v60, 4  ;;  %v263_v57 = vld [vmem:[#allocation7 + $0xf8] sm:$0xff] }
 0x13b   :  { %v1024_v35 = vrot.slane %v1023_v61, 1  ;;  %v976_v12 = vrot.slane %v975_v62, 1  ;;  %v1028_v16 = vrot.slane %v1027_v63, 2  ;;  %v980_v17 = vrot.slane %v979_v34, 2  ;;  %v569_v18 = vpop.permute.xlu1 %568  ;;  %v513_v20 = vpop.permute.xlu0 %512 }
 0x13c   :  { %v1033_v21 = vadd.f32 %v1032_v11, %v788_v59  ;;  %v985_v5 = vadd.f32 %v984_v52, %v780_v60  ;;  %v789_v22 = vmul.f32 %v569_v18, %v269_v4  ;;  %v781_v24 = vmul.f32 %v513_v20, %v261_v6 }
 0x13d   :  { %v1025_v25 = vadd.f32 %v1024_v35, %v1023_v61  ;;  %v977_v26 = vadd.f32 %v976_v12, %v975_v62  ;;  %v1029_v28 = vadd.f32 %v1028_v16, %v1027_v63  ;;  %v981_v32 = vadd.f32 %v980_v17, %v979_v34  ;;  %v273_v12 = vld [vmem:[#allocation7 + $0x148] sm:$0xff]  ;;  %v272_v16 = vld [vmem:[#allocation7 + $0x140] sm:$0xff] }
 0x13e   :  { %v1034_v33 = vrot.slane %v1033_v21, 2  ;;  %v986_v15 = vrot.slane %v985_v5, 2  ;;  %v1038_v13 = vrot.slane %v789_v22, 4  ;;  %v990_v36 = vrot.slane %v781_v24, 4 }
 0x13f   :  { %v1316_v39 = vsel %vm1210_vm2, %v1025_v25, %v1315_v9  ;;  %v1309_v40 = vsel %vm1210_vm2, %v977_v26, %v1308_v8  ;;  %v1030_v41 = vrot.slane %v1029_v28, 1  ;;  %v982_v42 = vrot.slane %v981_v32, 1  ;;  %v576_v43 = vpop.permute.xlu1 %575  ;;  %v520_v44 = vpop.permute.xlu0 %519 }
 0x140   :  { %v1035_v45 = vadd.f32 %v1034_v33, %v1033_v21  ;;  %v987_v46 = vadd.f32 %v986_v15, %v985_v5  ;;  %v1039_v29 = vadd.f32 %v1038_v13, %v789_v22  ;;  %v991_v47 = vadd.f32 %v990_v36, %v781_v24 }
 0x141   :  { %v1031_v48 = vadd.f32 %v1030_v41, %v1029_v28  ;;  %v983_v49 = vadd.f32 %v982_v42, %v981_v32  ;;  %v790_v50 = vmul.f32 %v576_v43, %v270_v37  ;;  %v782_v30 = vmul.f32 %v520_v44, %v262_v38  ;;  %v280_v41 = vld [vmem:[#allocation7 + $0x180] sm:$0xff] }
 0x142   :  { %v1036_v51 = vrot.slane %v1035_v45, 1  ;;  %v988_v53 = vrot.slane %v987_v46, 1  ;;  %v1040_v54 = vrot.slane %v1039_v29, 2  ;;  %v992_v55 = vrot.slane %v991_v47, 2 }
 0x143   :  { %v1317_v58 = vsel %vm1212_vm3, %v1031_v48, %v1316_v39  ;;  %v1310_v59 = vsel %vm1212_vm3, %v983_v49, %v1309_v40  ;;  %v1044_v60 = vrot.slane %v790_v50, 4  ;;  %v996_v61 = vrot.slane %v782_v30, 4  ;;  %v583_v62 = vpop.permute.xlu1 %582  ;;  %v527_v63 = vpop.permute.xlu0 %526  ;;  %v281_v40 = vld [vmem:[#allocation7 + $0x188] sm:$0xff] }
 0x144   :  { %v1037_v34 = vadd.f32 %v1036_v51, %v1035_v45  ;;  %v989_v4 = vadd.f32 %v988_v53, %v987_v46  ;;  %v1041_v6 = vadd.f32 %v1040_v54, %v1039_v29  ;;  %v993_v8 = vadd.f32 %v992_v55, %v991_v47 }
 0x145   :  { %v1045_v9 = vadd.f32 %v1044_v60, %v790_v50  ;;  %v997_v11 = vadd.f32 %v996_v61, %v782_v30  ;;  %v791_v52 = vmul.f32 %v583_v62, %v271_v56  ;;  %v783_v35 = vmul.f32 %v527_v63, %v263_v57  ;;  %v282_v63 = vld [vmem:[#allocation7 + $0x190] sm:$0xff] }
 0x146   :  { %v1318_v17 = vsel %vm1214_vm4, %v1037_v34, %v1317_v58  ;;  %v1311_v18 = vsel %vm1214_vm4, %v989_v4, %v1310_v59  ;;  %v1042_v20 = vrot.slane %v1041_v6, 1  ;;  %v994_v21 = vrot.slane %v993_v8, 1  ;;  %v274_v34 = vld [vmem:[#allocation7 + $0x150] sm:$0xff] }
 0x147   :  { %v1046_v5 = vrot.slane %v1045_v9, 2  ;;  %v998_v22 = vrot.slane %v997_v11, 2  ;;  %v1050_v24 = vrot.slane %v791_v52, 4  ;;  %v1002_v25 = vrot.slane %v783_v35, 4  ;;  %v597_v26 = vpop.permute.xlu1 %596  ;;  %v590_v28 = vpop.permute.xlu0 %589 }
 0x148   :  { %v1043_v32 = vadd.f32 %v1042_v20, %v1041_v6  ;;  %v995_v33 = vadd.f32 %v994_v21, %v993_v8  ;;  %v793_v15 = vmul.f32 %v597_v26, %v273_v12  ;;  %v792_v13 = vmul.f32 %v590_v28, %v272_v16  ;;  %v283_v28 = vld [vmem:[#allocation7 + $0x198] sm:$0xff] }
 0x149   :  { %v1047_v36 = vadd.f32 %v1046_v5, %v1045_v9  ;;  %v999_v37 = vadd.f32 %v998_v22, %v997_v11  ;;  %v1051_v38 = vadd.f32 %v1050_v24, %v791_v52  ;;  %v1003_v39 = vadd.f32 %v1002_v25, %v783_v35 }
 0x14a   :  { %v1062_v42 = vrot.slane %v793_v15, 4  ;;  %v1056_v43 = vrot.slane %v792_v13, 4  ;;  %v1312_v44 = vsel %vm1216_vm5, %v995_v33, %v1311_v18  ;;  %v1319_v45 = vsel %vm1216_vm5, %v1043_v32, %v1318_v17  ;;  %v275_v32 = vld [vmem:[#allocation7 + $0x158] sm:$0xff] }
 0x14b   :  { %v1048_v46 = vrot.slane %v1047_v36, 1  ;;  %v1000_v29 = vrot.slane %v999_v37, 1  ;;  %v1052_v47 = vrot.slane %v1051_v38, 2  ;;  %v1004_v48 = vrot.slane %v1003_v39, 2  ;;  %v653_v49 = vpop.permute.xlu1 %652  ;;  %v646_v50 = vpop.permute.xlu0 %645 }
 0x14c   :  { %v1063_v30 = vadd.f32 %v1062_v42, %v793_v15  ;;  %v1057_v51 = vadd.f32 %v1056_v43, %v792_v13  ;;  %v801_v53 = vmul.f32 %v653_v49, %v281_v40  ;;  %v800_v54 = vmul.f32 %v646_v50, %v280_v41 }
 0x14d   :  { %v1049_v55 = vadd.f32 %v1048_v46, %v1047_v36  ;;  %v1001_v56 = vadd.f32 %v1000_v29, %v999_v37  ;;  %v1053_v57 = vadd.f32 %v1052_v47, %v1051_v38  ;;  %v1005_v58 = vadd.f32 %v1004_v48, %v1003_v39  ;;  %v284_v46 = vld [vmem:[#allocation7 + $0x1a0] sm:$0xff] }
 0x14e   :  { %v1064_v59 = vrot.slane %v1063_v30, 2  ;;  %v1058_v60 = vrot.slane %v1057_v51, 2  ;;  %v1110_v61 = vrot.slane %v801_v53, 4  ;;  %v1104_v62 = vrot.slane %v800_v54, 4  ;;  %v276_v29 = vld [vmem:[#allocation7 + $0x160] sm:$0xff] }
 0x14f   :  { %v1054_v4 = vrot.slane %v1053_v57, 1  ;;  %v1006_v6 = vrot.slane %v1005_v58, 1  ;;  %v660_v8 = vpop.permute.xlu1 %659  ;;  %v604_v9 = vpop.permute.xlu0 %603  ;;  %v1313_v11 = vsel %vm1218_vm6, %v1001_v56, %v1312_v44  ;;  %v1320_v52 = vsel %vm1218_vm6, %v1049_v55, %v1319_v45 }
 0x150   :  { %v1065_v35 = vadd.f32 %v1064_v59, %v1063_v30  ;;  %v1059_v12 = vadd.f32 %v1058_v60, %v1057_v51  ;;  %v1111_v16 = vadd.f32 %v1110_v61, %v801_v53  ;;  %v1105_v17 = vadd.f32 %v1104_v62, %v800_v54 }
 0x151   :  { %v1055_v18 = vadd.f32 %v1054_v4, %v1053_v57  ;;  %v1007_v20 = vadd.f32 %v1006_v6, %v1005_v58  ;;  %v802_v21 = vmul.f32 %v660_v8, %v282_v63  ;;  %v794_v5 = vmul.f32 %v604_v9, %v274_v34  ;;  %v285_v4 = vld [vmem:[#allocation7 + $0x1a8] sm:$0xff] }
 0x152   :  { %v1066_v22 = vrot.slane %v1065_v35, 1  ;;  %v1060_v24 = vrot.slane %v1059_v12, 1  ;;  %v1112_v25 = vrot.slane %v1111_v16, 2  ;;  %v1106_v26 = vrot.slane %v1105_v17, 2  ;;  %v277_v6 = vld [vmem:[#allocation7 + $0x168] sm:$0xff] }
 0x153   :  { %v1116_v33 = vrot.slane %v802_v21, 4  ;;  %v1068_v15 = vrot.slane %v794_v5, 4  ;;  %v667_v13 = vpop.permute.xlu1 %666  ;;  %v611_v36 = vpop.permute.xlu0 %610  ;;  %v1314_v37 = vsel %vm1220_vm7, %v1007_v20, %v1313_v11  ;;  %v1321_v38 = vsel %vm1220_vm7, %v1055_v18, %v1320_v52 }
 0x154   :  { %v1067_v39 = vadd.f32 %v1066_v22, %v1065_v35  ;;  %v1113_v40 = vadd.f32 %v1112_v25, %v1111_v16  ;;  %v1107_v41 = vadd.f32 %v1106_v26, %v1105_v17  ;;  %v803_v44 = vmul.f32 %v667_v13, %v283_v28  ;;  %v286_v13 = vld [vmem:[#allocation7 + $0x1b0] sm:$0xff] }
 0x155   :  { %v1117_v42 = vadd.f32 %v1116_v33, %v802_v21  ;;  %v1069_v43 = vadd.f32 %v1068_v15, %v794_v5  ;;  %v795_v45 = vmul.f32 %v611_v36, %v275_v32  ;;  %v1061_v47 = vadd.f32 %v1060_v24, %v1059_v12  ;;  %v278_v36 = vld [vmem:[#allocation7 + $0x170] sm:$0xff] }
 0x156   :  { %v1114_v48 = vrot.slane %v1113_v40, 1  ;;  %v1108_v49 = vrot.slane %v1107_v41, 1  ;;  %v1353_v50 = vpack.c.bf16 %v1321_v38, %v1314_v37  ;;  %v1122_v53 = vrot.slane %v803_v44, 4 }
 0x157   :  { %v1118_v30 = vrot.slane %v1117_v42, 2  ;;  %v1070_v51 = vrot.slane %v1069_v43, 2  ;;  %v1074_v54 = vrot.slane %v795_v45, 4  ;;  %v674_v55 = vpop.permute.xlu1 %673  ;;  %v618_v56 = vpop.permute.xlu0 %617  ;;  %v1322_v22 = vsel %vm1208_vm1, %v1067_v39, %v1061_v47 }
 0x158   :  { %v1115_v57 = vadd.f32 %v1114_v48, %v1113_v40  ;;  %v1109_v58 = vadd.f32 %v1108_v49, %v1107_v41  ;;  %2093 = vmatmul.mubr.bf16.gmra.mrb[8].mxu0 %v1353_v50  ;;  %v804_v59 = vmul.f32 %v674_v55, %v284_v46  ;;  %v796_v60 = vmul.f32 %v618_v56, %v276_v29  ;;  %v279_v55 = vld [vmem:[#allocation7 + $0x178] sm:$0xff] }
 0x159   :  { %v1119_v61 = vadd.f32 %v1118_v30, %v1117_v42  ;;  %v1071_v62 = vadd.f32 %v1070_v51, %v1069_v43  ;;  %v1123_v63 = vadd.f32 %v1122_v53, %v803_v44  ;;  %v1075_v34 = vadd.f32 %v1074_v54, %v795_v45  ;;  %2096 = vmatprep.mubr.msk.bf16.mxu0 %vm2387_vm0, %v2700_v7  ;;  %v287_v54 = vld [vmem:[#allocation7 + $0x1b8] sm:$0xff] }
 0x15a   :  { %v1128_v8 = vrot.slane %v804_v59, 4  ;;  %v1080_v9 = vrot.slane %v796_v60, 4  ;;  %v1329_v24 = vsel %vm1208_vm1, %v1115_v57, %v1109_v58 }
 0x15b   :  { %v1120_v11 = vrot.slane %v1119_v61, 1  ;;  %v1072_v52 = vrot.slane %v1071_v62, 1  ;;  %v1124_v35 = vrot.slane %v1123_v63, 2  ;;  %v1076_v12 = vrot.slane %v1075_v34, 2  ;;  %v681_v16 = vpop.permute.xlu1 %680  ;;  %v625_v17 = vpop.permute.xlu0 %624 }
 0x15c   :  { %v1129_v18 = vadd.f32 %v1128_v8, %v804_v59  ;;  %v1081_v20 = vadd.f32 %v1080_v9, %v796_v60  ;;  %v805_v21 = vmul.f32 %v681_v16, %v285_v4  ;;  %v797_v5 = vmul.f32 %v625_v17, %v277_v6 }
 0x15d   :  { %v1125_v25 = vadd.f32 %v1124_v35, %v1123_v63  ;;  %v1077_v26 = vadd.f32 %v1076_v12, %v1075_v34  ;;  %v1121_v37 = vadd.f32 %v1120_v11, %v1119_v61  ;;  %v1073_v38 = vadd.f32 %v1072_v52, %v1071_v62  ;;  %v289_v52 = vld [vmem:[#allocation7 + $0x1c8] sm:$0xff] }
 0x15e   :  { %v1130_v28 = vrot.slane %v1129_v18, 2  ;;  %v1082_v32 = vrot.slane %v1081_v20, 2  ;;  %v1134_v33 = vrot.slane %v805_v21, 4  ;;  %v1086_v15 = vrot.slane %v797_v5, 4 }
 0x15f   :  { %v1126_v40 = vrot.slane %v1125_v25, 1  ;;  %v1078_v41 = vrot.slane %v1077_v26, 1  ;;  %v688_v42 = vpop.permute.xlu1 %687  ;;  %v632_v43 = vpop.permute.xlu0 %631  ;;  %v1330_v56 = vsel %vm1210_vm2, %v1121_v37, %v1329_v24  ;;  %v1323_v57 = vsel %vm1210_vm2, %v1073_v38, %v1322_v22  ;;  %v288_v24 = vld [vmem:[#allocation7 + $0x1c0] sm:$0xff]  ;;  %v291_v38 = vld [vmem:[#allocation7 + $0x1d8] sm:$0xff] }
 0x160   :  { %v1131_v44 = vadd.f32 %v1130_v28, %v1129_v18  ;;  %v1083_v45 = vadd.f32 %v1082_v32, %v1081_v20  ;;  %v1135_v46 = vadd.f32 %v1134_v33, %v805_v21  ;;  %v1087_v39 = vadd.f32 %v1086_v15, %v797_v5 }
 0x161   :  { %v1127_v29 = vadd.f32 %v1126_v40, %v1125_v25  ;;  %v1079_v47 = vadd.f32 %v1078_v41, %v1077_v26  ;;  %v806_v48 = vmul.f32 %v688_v42, %v286_v13  ;;  %v798_v49 = vmul.f32 %v632_v43, %v278_v36 }
 0x162   :  { %v1132_v50 = vrot.slane %v1131_v44, 1  ;;  %v1084_v30 = vrot.slane %v1083_v45, 1  ;;  %v1136_v51 = vrot.slane %v1135_v46, 2  ;;  %v1088_v53 = vrot.slane %v1087_v39, 2 }
 0x163   :  { %v1140_v58 = vrot.slane %v806_v48, 4  ;;  %v1092_v59 = vrot.slane %v798_v49, 4  ;;  %v695_v60 = vpop.permute.xlu1 %694  ;;  %v639_v61 = vpop.permute.xlu0 %638  ;;  %v1331_v62 = vsel %vm1212_vm3, %v1127_v29, %v1330_v56  ;;  %v1324_v35 = vsel %vm1212_vm3, %v1079_v47, %v1323_v57  ;;  %v290_v47 = vld [vmem:[#allocation7 + $0x1d0] sm:$0xff] }
 0x164   :  { %v1085_v63 = vadd.f32 %v1084_v30, %v1083_v45  ;;  %v1137_v34 = vadd.f32 %v1136_v51, %v1135_v46  ;;  %v1089_v4 = vadd.f32 %v1088_v53, %v1087_v39  ;;  %v807_v9 = vmul.f32 %v695_v60, %v287_v54  ;;  %v2169_v53 = vld [vmem:[#allocation11 + $0x20] sm:$0xff]  }
 0x165   :  { %v1141_v6 = vadd.f32 %v1140_v58, %v806_v48  ;;  %v1093_v8 = vadd.f32 %v1092_v59, %v798_v49  ;;  %v799_v11 = vmul.f32 %v639_v61, %v279_v55  ;;  %v1133_v12 = vadd.f32 %v1132_v50, %v1131_v44  ;;  %2113 = vmatpush3.bf16.msra.mxu1 %v2169_v53 }
 0x166   :  { %v1138_v16 = vrot.slane %v1137_v34, 1  ;;  %v1090_v17 = vrot.slane %v1089_v4, 1  ;;  %v1146_v21 = vrot.slane %v807_v9, 4  ;;  %v1325_v25 = vsel %vm1214_vm4, %v1085_v63, %v1324_v35  ;;  %v292_v63 = vld [vmem:[#allocation7 + $0x1e0] sm:$0xff]  ;;  %2114 = vmatprep.subr.bf16.mxu1 %v2700_v7 }
 0x167   :  { %v1142_v18 = vrot.slane %v1141_v6, 2  ;;  %v1094_v20 = vrot.slane %v1093_v8, 2  ;;  %v1098_v5 = vrot.slane %v799_v11, 4  ;;  %v709_v22 = vpop.permute.xlu1 %708  ;;  %v1332_v40 = vsel %vm1214_vm4, %v1133_v12, %v1331_v62  ;;  %v293_v62 = vld [vmem:[#allocation7 + $0x1e8] sm:$0xff] }
 0x168   :  { %v1139_v26 = vadd.f32 %v1138_v16, %v1137_v34  ;;  %v1091_v28 = vadd.f32 %v1090_v17, %v1089_v4  ;;  %v809_v32 = vmul.f32 %v709_v22, %v289_v52  ;;  %v702_v33 = vpop.permute.xlu0 %701  ;;  %v1147_v36 = vadd.f32 %v1146_v21, %v807_v9  ;;  %v2170_v17 = vld [vmem:[#allocation11 + $0x28] sm:$0xff]  }
 0x169   :  { %v1143_v15 = vadd.f32 %v1142_v18, %v1141_v6  ;;  %v1095_v13 = vadd.f32 %v1094_v20, %v1093_v8  ;;  %v1099_v37 = vadd.f32 %v1098_v5, %v799_v11  ;;  %v808_v42 = vmul.f32 %v702_v33, %v288_v24  ;;  %2115 = vmatpush3.bf16.msra.mxu1 %v2170_v17  ;;  %v2171_v33 = vld [vmem:[#allocation11 + $0x30] sm:$0xff]  }
 0x16a   :  { %v1158_v41 = vrot.slane %v809_v32, 4  ;;  %v1326_v43 = vsel %vm1216_vm5, %v1091_v28, %v1325_v25  ;;  %v1148_v46 = vrot.slane %v1147_v36, 2  ;;  %v1333_v51 = vsel %vm1216_vm5, %v1139_v26, %v1332_v40  ;;  %v295_v28 = vld [vmem:[#allocation7 + $0x1f8] sm:$0xff]  ;;  %2116 = vmatprep.subr.bf16.mxu1 %v2700_v7 }
 0x16b   :  { %v1144_v44 = vrot.slane %v1143_v15, 1  ;;  %v1096_v45 = vrot.slane %v1095_v13, 1  ;;  %v1100_v39 = vrot.slane %v1099_v37, 2  ;;  %v723_v29 = vpop.permute.xlu1 %722  ;;  %v1152_v49 = vrot.slane %v808_v42, 4 }
 0x16c   :  { %v1159_v48 = vadd.f32 %v1158_v41, %v809_v32  ;;  %v811_v50 = vmul.f32 %v723_v29, %v291_v38  ;;  %v716_v30 = vpop.permute.xlu0 %715  ;;  %v1149_v56 = vadd.f32 %v1148_v46, %v1147_v36  ;;  %v294_v32 = vld [vmem:[#allocation7 + $0x1f0] sm:$0xff] }
 0x16d   :  { %v1145_v54 = vadd.f32 %v1144_v44, %v1143_v15  ;;  %v1097_v55 = vadd.f32 %v1096_v45, %v1095_v13  ;;  %v1101_v57 = vadd.f32 %v1100_v39, %v1099_v37  ;;  %v1153_v59 = vadd.f32 %v1152_v49, %v808_v42  ;;  %2117 = vmatpush3.bf16.msra.mxu1 %v2171_v33 }
 0x16e   :  { %v1160_v58 = vrot.slane %v1159_v48, 2  ;;  %v1170_v60 = vrot.slane %v811_v50, 4  ;;  %v810_v61 = vmul.f32 %v716_v30, %v290_v47  ;;  %v1150_v34 = vrot.slane %v1149_v56, 1  ;;  %v2172_v30 = vld [vmem:[#allocation11 + $0x38] sm:$0xff]   ;;  %2118 = vmatprep.subr.bf16.mxu1 %v2700_v7 }
 0x16f   :  { %v1102_v4 = vrot.slane %v1101_v57, 1  ;;  %v737_v6 = vpop.permute.xlu1 %736  ;;  %v1327_v8 = vsel %vm1218_vm6, %v1097_v55, %v1326_v43  ;;  %v1334_v9 = vsel %vm1218_vm6, %v1145_v54, %v1333_v51  ;;  %v1154_v52 = vrot.slane %v1153_v59, 2 }
 0x170   :  { %v1161_v11 = vadd.f32 %v1160_v58, %v1159_v48  ;;  %v1171_v35 = vadd.f32 %v1170_v60, %v811_v50  ;;  %v1164_v12 = vrot.slane %v810_v61, 4  ;;  %v730_v16 = vpop.permute.xlu0 %729  ;;  %v1151_v18 = vadd.f32 %v1150_v34, %v1149_v56 }
 0x171   :  { %v1103_v20 = vadd.f32 %v1102_v4, %v1101_v57  ;;  %v813_v21 = vmul.f32 %v737_v6, %v293_v62  ;;  %v812_v5 = vmul.f32 %v730_v16, %v292_v63  ;;  %v1155_v24 = vadd.f32 %v1154_v52, %v1153_v59  ;;  %2119 = vmatpush3.bf16.msra.mxu1 %v2172_v30 }
 0x172   :  { %v1162_v22 = vrot.slane %v1161_v11, 1  ;;  %v1172_v25 = vrot.slane %v1171_v35, 2  ;;  %v1165_v26 = vadd.f32 %v1164_v12, %v810_v61  ;;  %v1335_v38 = vsel %vm1220_vm7, %v1151_v18, %v1334_v9 }
 0x173   :  { %v1182_v15 = vrot.slane %v813_v21, 4  ;;  %v1176_v13 = vrot.slane %v812_v5, 4  ;;  %v751_v36 = vpop.permute.xlu1 %750  ;;  %v1328_v37 = vsel %vm1220_vm7, %v1103_v20, %v1327_v8  ;;  %v1156_v41 = vrot.slane %v1155_v24, 1 }
 0x174   :  { %v1163_v40 = vadd.f32 %v1162_v22, %v1161_v11  ;;  %v1173_v42 = vadd.f32 %v1172_v25, %v1171_v35  ;;  %v1166_v43 = vrot.slane %v1165_v26, 2  ;;  %v744_v44 = vpop.permute.xlu0 %743  ;;  %v815_v39 = vmul.f32 %v751_v36, %v295_v28  ;;  %v2024_v28 = vld [vmem:[%s2849_s5] ss:$0 sm:$0xff] }
 0x175   :  { %v1183_v45 = vadd.f32 %v1182_v15, %v813_v21  ;;  %v1177_v46 = vadd.f32 %v1176_v13, %v812_v5  ;;  %v814_v29 = vmul.f32 %v744_v44, %v294_v32  ;;  %v1157_v47 = vadd.f32 %v1156_v41, %v1155_v24 }
 0x176   :  { %v1174_v48 = vrot.slane %v1173_v42, 1  ;;  %v1167_v49 = vadd.f32 %v1166_v43, %v1165_v26  ;;  %v1354_v50 = vpack.c.bf16 %v1335_v38, %v1328_v37  ;;  %v1194_v54 = vrot.slane %v815_v39, 4 }
 0x177   :  { %v1184_v51 = vrot.slane %v1183_v45, 2  ;;  %v1178_v53 = vrot.slane %v1177_v46, 2  ;;  %v1188_v55 = vrot.slane %v814_v29, 4  ;;  %v1336_v61 = vsel %vm1208_vm1, %v1163_v40, %v1157_v47 }
 0x178   :  { %v1168_v56 = vrot.slane %v1167_v49, 1  ;;  %2097 = vmatmul.mubr.bf16.gmra.mrb[12].mxu0 %v1354_v50  ;;  %v1195_v59 = vadd.f32 %v1194_v54, %v815_v39  ;;  %v1175_v62 = vadd.f32 %v1174_v48, %v1173_v42 }
 0x179   :  { %v1185_v57 = vadd.f32 %v1184_v51, %v1183_v45  ;;  %v1179_v58 = vadd.f32 %v1178_v53, %v1177_v46  ;;  %v1189_v60 = vadd.f32 %v1188_v55, %v814_v29  ;;  %2100 = vmatprep.mubr.msk.bf16.mxu0 %vm2387_vm0, %v2700_v7 }
 0x17a   :  { %v1169_v63 = vadd.f32 %v1168_v56, %v1167_v49  ;;  %v1196_v6 = vrot.slane %v1195_v59, 2 }
 0x17b   :  { %v1186_v34 = vrot.slane %v1185_v57, 1  ;;  %v1180_v4 = vrot.slane %v1179_v58, 1  ;;  %v1190_v8 = vrot.slane %v1189_v60, 2 }
 0x17c   :  { %v1337_v9 = vsel %vm1210_vm2, %v1169_v63, %v1336_v61  ;;  %v1197_v52 = vadd.f32 %v1196_v6, %v1195_v59 }
 0x17d   :  { %v1181_v11 = vadd.f32 %v1180_v4, %v1179_v58  ;;  %v1191_v35 = vadd.f32 %v1190_v8, %v1189_v60  ;;  %v1187_v12 = vadd.f32 %v1186_v34, %v1185_v57  ;;  %v1338_v16 = vsel %vm1212_vm3, %v1175_v62, %v1337_v9 }
 0x17e   :  { %v1198_v17 = vrot.slane %v1197_v52, 1 }
 0x17f   :  { %v1192_v18 = vrot.slane %v1191_v35, 1  ;;  %v1339_v20 = vsel %vm1214_vm4, %v1181_v11, %v1338_v16 }
 0x180   :  { %v1199_v21 = vadd.f32 %v1198_v17, %v1197_v52  ;;  %v1340_v22 = vsel %vm1216_vm5, %v1187_v12, %v1339_v20  ;;  %v2760_v17 = vld [vmem:[%s2851_s7] ss:$0 sm:$0xff]  ;;  %s2390_s7 = smov [#allocation13]  }
 0x181   :  { %v1193_v5 = vadd.f32 %v1192_v18, %v1191_v35  ;;  %s2012_s10 = sshll.u32 %s2390_s7, 4  ;;  %s2013_s10 = int_to_ptr.vmem [resolvable:$true] %s2012_s10 }
 0x182   :  { %s2344_s11 = scalar_lea.vmem %s2013_s10, 128  ;;  %p2349_p7 = scmp.lt.s32.totalorder %s2013_s10, %s2013_s10 }
 0x183   :  { %v1341_v24 = vsel %vm1218_vm6, %v1193_v5, %v1340_v22  ;;  %v2388_v22 = vmov 1966171168   ;;  %p2345_p6 = scmp.ne.s32.totalorder %s2013_s10, %s2344_s11  ;;  %p2350_p8 = scmp.lt.s32.totalorder %s2344_s11, %s2344_s11 }
 0x184   :  { %v1342_v25 = vsel %vm1220_vm7, %v1199_v21, %v1341_v24  ;;  %v1668_v24 = vunpack.c.l.s4 %v2388_v22 }
 0x185   :  { %v1355_v26 = vpack.c.bf16 %v1342_v25, %v1342_v25  ;;  %p2351_p9 = por %p2350_p8, %p2349_p7 }
 0x187   :  { %2101 = vmatmul.mubr.bf16.gmra.mrb[16].mxu0 %v1355_v26  ;;  %p2352_p10 = pnand %p2351_p9, %p2345_p6 }
 0x1eb   :  { %v1461_v32 = vpop.f32.mrb[0].mxu0 }
 0x1ec   :  { %v1462_v33 = vadd.f32 %v2024_v28, %v1461_v32  ;;  %v2086_v15 = vpop.f32.mrb[1].mxu0 }
 0x1ed   :  { %v1464_v13 = vpop.f32.mrb[2].mxu0 }
 0x1ee   :  { %v1465_v36 = vadd.f32 %v2024_v28, %v1464_v13  ;;  %v2087_v37 = vpop.f32.mrb[3].mxu0  ;;  %2173 = vtanh.f32 %v1462_v33 }
 0x1f0   :  { %2175 = vtanh.f32 %v1465_v36 }
 0x1f8   :  { %v2174_v38 = vpop.eup %2173 }
 0x1fa   :  { %v2176_v40 = vpop.eup %2175 }
 0x1fb   :  { %v1508_v41 = vpack.c.bf16 %v2176_v40, %v2174_v38 }
 0x1fd   :  { %2121 = vmatmul.mubr.bf16.vlgmr.msra.gmra.mrb[0].mxu1 %v1508_v41 }
 0x1fe   :  { %2124 = vmatprep.mubr.msk.bf16.mxu1 %vm2387_vm0, %v2700_v7 }
 0x20b   :  { %v1469_v42 = vpop.f32.mrb[4].mxu0 }
 0x20c   :  { %v1470_v43 = vadd.f32 %v2024_v28, %v1469_v42  ;;  %v2090_v44 = vpop.f32.mrb[5].mxu0 }
 0x20d   :  { %v1472_v45 = vpop.f32.mrb[6].mxu0 }
 0x20e   :  { %v1473_v46 = vadd.f32 %v2024_v28, %v1472_v45  ;;  %v2091_v39 = vpop.f32.mrb[7].mxu0  ;;  %2177 = vtanh.f32 %v1470_v43 }
 0x210   :  { %2179 = vtanh.f32 %v1473_v46 }
 0x218   :  { %v2178_v29 = vpop.eup %2177 }
 0x21a   :  { %v2180_v47 = vpop.eup %2179 }
 0x21b   :  { %v1509_v48 = vpack.c.bf16 %v2180_v47, %v2178_v29 }
 0x21d   :  { %2125 = vmatmul.mubr.bf16.gmra.mrb[4].mxu1 %v1509_v48 }
 0x21e   :  { %2128 = vmatprep.mubr.msk.bf16.mxu1 %vm2387_vm0, %v2700_v7 }
 0x22b   :  { %v1477_v49 = vpop.f32.mrb[8].mxu0 }
 0x22c   :  { %v1478_v50 = vadd.f32 %v2024_v28, %v1477_v49  ;;  %v2094_v30 = vpop.f32.mrb[9].mxu0 }
 0x22d   :  { %v1480_v51 = vpop.f32.mrb[10].mxu0 }
 0x22e   :  { %v1481_v53 = vadd.f32 %v2024_v28, %v1480_v51  ;;  %v2095_v54 = vpop.f32.mrb[11].mxu0  ;;  %2181 = vtanh.f32 %v1478_v50 }
 0x230   :  { %2183 = vtanh.f32 %v1481_v53 }
 0x238   :  { %v2182_v55 = vpop.eup %2181 }
 0x23a   :  { %v2184_v56 = vpop.eup %2183 }
 0x23b   :  { %v1510_v57 = vpack.c.bf16 %v2184_v56, %v2182_v55 }
 0x23d   :  { %2129 = vmatmul.mubr.bf16.gmra.mrb[8].mxu1 %v1510_v57 }
 0x23e   :  { %2132 = vmatprep.mubr.msk.bf16.mxu1 %vm2387_vm0, %v2700_v7 }
 0x24b   :  { %v1485_v58 = vpop.f32.mrb[12].mxu0 }
 0x24c   :  { %v1486_v59 = vadd.f32 %v2024_v28, %v1485_v58  ;;  %v2098_v60 = vpop.f32.mrb[13].mxu0 }
 0x24d   :  { %v1488_v61 = vpop.f32.mrb[14].mxu0 }
 0x24e   :  { %v1489_v62 = vadd.f32 %v2024_v28, %v1488_v61  ;;  %v2099_v63 = vpop.f32.mrb[15].mxu0  ;;  %2185 = vtanh.f32 %v1486_v59 }
 0x250   :  { %2187 = vtanh.f32 %v1489_v62 }
 0x258   :  { %v2186_v34 = vpop.eup %2185 }
 0x25a   :  { %v2188_v4 = vpop.eup %2187  ;;  %v1493_v6 = vpop.f32.mrb[16].mxu0 }
 0x25b   :  { %v1494_v8 = vadd.f32 %v2024_v28, %v1493_v6  ;;  %v2102_v9 = vpop.f32.mrb[17].mxu0  ;;  %v1511_v11 = vpack.c.bf16 %v2188_v4, %v2186_v34 }
 0x25c   :  { %v1496_v52 = vpop.f32.mrb[18].mxu0 }
 0x25d   :  { %2189 = vtanh.f32 %v1494_v8  ;;  %2133 = vmatmul.mubr.bf16.gmra.mrb[12].mxu1 %v1511_v11  ;;  %v2103_v35 = vpop.f32.mrb[19].mxu0 }
 0x25e   :  { %2136 = vmatprep.mubr.msk.bf16.mxu1 %vm2387_vm0, %v2700_v7  ;;  %v1669_v7 = vunpack.c.0.s8 %v1668_v24 }
 0x260   :  { %v1672_v28 = vsub.s32 %v1669_v7, %v2518_v1 }
 0x267   :  { %v2190_v12 = vpop.eup %2189 }
 0x268   :  { %v1512_v16 = vpack.c.bf16 %v2190_v12, %v2190_v12 }
 0x26a   :  { %2137 = vmatmul.mubr.bf16.gmra.mrb[16].mxu1 %v1512_v16 }
 0x2d0   :  { %v1618_v18 = vpop.f32.mrb[0].mxu1 }
 0x2d1   :  { %v1619_v20 = vadd.f32 %v2760_v17, %v1618_v18  ;;  %v2122_v21 = vpop.f32.mrb[1].mxu1 }
 0x2d2   :  { %v1621_v5 = vpop.f32.mrb[2].mxu1 }
 0x2d3   :  { %2191 = vtanh.f32 %v1619_v20  ;;  %v1622_v25 = vadd.f32 %v2760_v17, %v1621_v5  ;;  %v2123_v26 = vpop.f32.mrb[3].mxu1 }
 0x2d5   :  { %2193 = vtanh.f32 %v1622_v25 }
 0x2dd   :  { %v2765_v32 = vpop.eup %2191 }
 0x2de   :  { %v1673_v33 = vrot.slane %v2765_v32, %v1672_v28  ;;  %v1666_v59 = vcombine.high %v2765_v32, %v2765_v32 }
 0x2df   :  { %v2194_v15 = vpop.eup %2193 }
 0x2e0   :  { %v1782_v13 = vmul.f32 %v2194_v15, %v2194_v15  ;;  %v1689_v36 = vrot.slane %v1673_v33, %v1672_v28  ;;  %v1681_v46 = vcombine.high %v1673_v33, %v1673_v33  ;;  %v1680_v62 = vrot.slane %v1666_v59, %v1672_v28 }
 0x2e2   :  { %1790 = vadd.xlane.f32.xlu0 %v1782_v13  ;;  %v1718_v37 = vrot.slane %v1689_v36, %v2521_v2  ;;  %v1703_v39 = vrot.slane %v1681_v46, %v1672_v28  ;;  %v1711_v29 = vcombine.high %v1689_v36, %v1689_v36  ;;  %v1696_v34 = vrot.slane %v1680_v62, %v1672_v28 }
 0x2e3   :  { %v1682_v24 = vcombine.high %v1680_v62, %v1680_v62 }
 0x2e4   :  { %v2769_v38 = vmul.f32 %v2194_v15, %v1718_v37  ;;  %v1722_v47 = vrot.slane %v1703_v39, %v2521_v2  ;;  %v1726_v30 = vrot.slane %v1711_v29, %v2521_v2  ;;  %v1713_v63 = vcombine.high %v1703_v39, %v1703_v39 }
 0x2e5   :  { %v1734_v11 = vrot.slane %v1696_v34, %v2521_v2  ;;  %v1710_v25 = vrot.slane %v1682_v24, %v1672_v28  ;;  %v1712_v26 = vcombine.high %v1696_v34, %v1696_v34  ;;  %v1779_v28 = vmul.f32 %v2765_v32, %v2765_v32 }
 0x2e6   :  { %v1730_v4 = vrot.slane %v1713_v63, %v2521_v2  ;;  %v1815_v32 = vand.u32 127, %v120_v0 }
 0x2e7   :  { %v1738_v7 = vrot.slane %v1710_v25, %v2521_v2  ;;  %v1714_v39 = vcombine.high %v1710_v25, %v1710_v25 }
 0x2f0   :  { %v1626_v40 = vpop.f32.mrb[4].mxu1 }
 0x2f1   :  { %v1627_v41 = vadd.f32 %v2760_v17, %v1626_v40  ;;  %v2126_v42 = vpop.f32.mrb[5].mxu1 }
 0x2f2   :  { %v1629_v43 = vpop.f32.mrb[6].mxu1 }
 0x2f3   :  { %2195 = vtanh.f32 %v1627_v41  ;;  %v1630_v44 = vadd.f32 %v2760_v17, %v1629_v43  ;;  %v2127_v45 = vpop.f32.mrb[7].mxu1  ;;  %v1742_v41 = vrot.slane %v1712_v26, %v2521_v2 }
 0x2f5   :  { %2197 = vtanh.f32 %v1630_v44 }
 0x2fd   :  { %v2196_v48 = vpop.eup %2195 }
 0x2fe   :  { %v1783_v49 = vmul.f32 %v2196_v48, %v2196_v48  ;;  %v1756_v50 = vmul.f32 %v2196_v48, %v1722_v47 }
 0x2ff   :  { %v2198_v51 = vpop.eup %2197 }
 0x300   :  { %1792 = vadd.xlane.f32.xlu1 %v1783_v49  ;;  %v1784_v53 = vmul.f32 %v2198_v51, %v2198_v51  ;;  %v1757_v54 = vmul.f32 %v2198_v51, %v1726_v30 }
 0x302   :  { %1794 = vadd.xlane.f32.xlu0 %v1784_v53  ;;  %v2792_v53 = vsub.s32 %v1815_v32, %v2518_v1 }
 0x310   :  { %v1634_v55 = vpop.f32.mrb[8].mxu1 }
 0x311   :  { %v1635_v56 = vadd.f32 %v2760_v17, %v1634_v55  ;;  %v2130_v57 = vpop.f32.mrb[9].mxu1 }
 0x312   :  { %v1637_v58 = vpop.f32.mrb[10].mxu1 }
 0x313   :  { %2199 = vtanh.f32 %v1635_v56  ;;  %v1638_v60 = vadd.f32 %v2760_v17, %v1637_v58  ;;  %v2131_v61 = vpop.f32.mrb[11].mxu1 }
 0x315   :  { %2201 = vtanh.f32 %v1638_v60 }
 0x31d   :  { %v2200_v6 = vpop.eup %2199 }
 0x31e   :  { %v1785_v8 = vmul.f32 %v2200_v6, %v2200_v6  ;;  %v1758_v9 = vmul.f32 %v2200_v6, %v1730_v4 }
 0x31f   :  { %v2202_v52 = vpop.eup %2201 }
 0x320   :  { %1796 = vadd.xlane.f32.xlu0 %v1785_v8  ;;  %v1786_v35 = vmul.f32 %v2202_v52, %v2202_v52  ;;  %v1759_v12 = vmul.f32 %v2202_v52, %v1734_v11 }
 0x322   :  { %1798 = vadd.xlane.f32.xlu1 %v1786_v35 }
 0x330   :  { %v1642_v16 = vpop.f32.mrb[12].mxu1 }
 0x331   :  { %v1643_v18 = vadd.f32 %v2760_v17, %v1642_v16  ;;  %v2134_v20 = vpop.f32.mrb[13].mxu1 }
 0x332   :  { %v1645_v21 = vpop.f32.mrb[14].mxu1 }
 0x333   :  { %2203 = vtanh.f32 %v1643_v18  ;;  %v1646_v5 = vadd.f32 %v2760_v17, %v1645_v21  ;;  %v2135_v22 = vpop.f32.mrb[15].mxu1 }
 0x335   :  { %2205 = vtanh.f32 %v1646_v5 }
 0x33d   :  { %v2204_v33 = vpop.eup %2203  ;;  %v1650_v15 = vpop.f32.mrb[16].mxu1 }
 0x33e   :  { %v1651_v13 = vadd.f32 %v2760_v17, %v1650_v15  ;;  %v1787_v36 = vmul.f32 %v2204_v33, %v2204_v33  ;;  %v2138_v37 = vpop.f32.mrb[17].mxu1  ;;  %v1760_v40 = vmul.f32 %v2204_v33, %v1738_v7  ;;  %v1746_v17 = vrot.slane %v1714_v39, %v2521_v2 }
 0x33f   :  { %v2206_v42 = vpop.eup %2205  ;;  %v1653_v43 = vpop.f32.mrb[18].mxu1 }
 0x340   :  { %2207 = vtanh.f32 %v1651_v13  ;;  %1800 = vadd.xlane.f32.xlu0 %v1787_v36  ;;  %v1788_v44 = vmul.f32 %v2206_v42, %v2206_v42  ;;  %v2139_v45 = vpop.f32.mrb[19].mxu1  ;;  %v1761_v46 = vmul.f32 %v2206_v42, %v1742_v41 }
 0x342   :  { %1802 = vadd.xlane.f32.xlu1 %v1788_v44 }
 0x346   :  { %1780 = vadd.xlane.f32.xlu1 %v1779_v28 }
 0x34a   :  { %v2208_v29 = vpop.eup %2207  ;;  %1765 = vadd.xlane.f32.xlu1 %v1756_v50 }
 0x34b   :  { %v1789_v47 = vmul.f32 %v2208_v29, %v2208_v29  ;;  %v1762_v48 = vmul.f32 %v2208_v29, %v1746_v17 }
 0x34d   :  { %1804 = vadd.xlane.f32.xlu0 %v1789_v47 }
 0x34e   :  { %1769 = vadd.xlane.f32.xlu1 %v1758_v9 }
 0x351   :  { %1763 = vadd.xlane.f32.xlu0 %v2769_v38 }
 0x352   :  { %1773 = vadd.xlane.f32.xlu1 %v1760_v40 }
 0x355   :  { %1767 = vadd.xlane.f32.xlu0 %v1757_v54 }
 0x356   :  { %1777 = vadd.xlane.f32.xlu1 %v1762_v48 }
 0x359   :  { %1771 = vadd.xlane.f32.xlu0 %v1759_v12  ;;  %v2389_v12 = vmov 0  }
 0x35a   :  { %2156 = vset.pattern.permute.xlu0 %v2389_v12  ;;  %2155 = vset.pattern.permute.xlu1 %v2389_v12 }
 0x35d   :  { %1775 = vadd.xlane.f32.xlu0 %v1761_v46 }
 0x36f   :  { %v1791_v49 = vpop.xlane.xlu0 %1790 }
 0x370   :  { %v1819_v56 = vrot.slane %v1791_v49, %v2792_v53 }
 0x38d   :  { %v1793_v30 = vpop.xlane.xlu1 %1792 }
 0x38e   :  { %v1823_v50 = vrot.slane %v1793_v30, %v2792_v53 }
 0x38f   :  { %v1795_v51 = vpop.xlane.xlu0 %1794 }
 0x390   :  { %v1827_v38 = vrot.slane %v1795_v51, %v2792_v53  ;;  %v1848_v54 = vsel %vm1208_vm1, %v1823_v50, %v1819_v56 }
 0x392   :  { %v1849_v0 = vsel %vm1210_vm2, %v1827_v38, %v1848_v54 }
 0x3ad   :  { %v1797_v55 = vpop.xlane.xlu0 %1796 }
 0x3ae   :  { %v1831_v57 = vrot.slane %v1797_v55, %v2792_v53 }
 0x3af   :  { %v1799_v58 = vpop.xlane.xlu1 %1798 }
 0x3b0   :  { %v1835_v60 = vrot.slane %v1799_v58, %v2792_v53  ;;  %v1850_v1 = vsel %vm1212_vm3, %v1831_v57, %v1849_v0 }
 0x3b2   :  { %v1851_v63 = vsel %vm1214_vm4, %v1835_v60, %v1850_v1 }
 0x3cd   :  { %v1801_v59 = vpop.xlane.xlu0 %1800 }
 0x3ce   :  { %v1839_v61 = vrot.slane %v1801_v59, %v2792_v53 }
 0x3cf   :  { %v1803_v62 = vpop.xlane.xlu1 %1802 }
 0x3d0   :  { %v1843_v34 = vrot.slane %v1803_v62, %v2792_v53  ;;  %v1852_v4 = vsel %vm1216_vm5, %v1839_v61, %v1851_v63 }
 0x3d2   :  { %v1853_v9 = vsel %vm1218_vm6, %v1843_v34, %v1852_v4 }
 0x3d3   :  { %v1781_v11 = vpop.xlane.xlu1 %1780 }
 0x3da   :  { %v1805_v6 = vpop.xlane.xlu0 %1804 }
 0x3db   :  { %v1847_v8 = vrot.slane %v1805_v6, %v2792_v53 }
 0x3dd   :  { %v1854_v52 = vsel %vm1220_vm7, %v1847_v8, %v1853_v9 }
 0x3de   :  { %v1856_v35 = vmul.f32 %v1854_v52, %v1781_v11  ;;  %v1764_v26 = vpop.xlane.xlu0 %1763 }
 0x3e0   :  { %2209 = vrsqrt.f32 %v1856_v35 }
 0x3ea   :  { %v2210_v16 = vpop.eup %2209 }
 0x3eb   :  { %v1862_v18 = vrot.slane %v2210_v16, %v2521_v2  ;;  %v1869_v20 = vrot.slane %v2210_v16, %v2524_v3  ;;  %v1883_v21 = vrot.slane %v2210_v16, %v2536_v14  ;;  %v1876_v5 = vrot.slane %v2210_v16, %v2531_v10  ;;  %v1766_v3 = vpop.xlane.xlu1 %1765  ;;  %v1768_v14 = vpop.xlane.xlu0 %1767 }
 0x3ec   :  { %v1897_v22 = vrot.slane %v2210_v16, %v2551_v23  ;;  %v1890_v24 = vrot.slane %v2210_v16, %v2544_v19  ;;  %v1911_v25 = vrot.slane %v2210_v16, %v2563_v31  ;;  %v1904_v2 = vrot.slane %v2210_v16, %v2557_v27 }
 0x3ed   :  { %1864 = vbcast.lane.b32.xlu0 %v1862_v18, 256  ;;  %1871 = vbcast.lane.b32.xlu1 %v1869_v20, 256 }
 0x3ef   :  { %v1770_v7 = vpop.xlane.xlu1 %1769  ;;  %v1772_v10 = vpop.xlane.xlu0 %1771 }
 0x3f1   :  { %1885 = vbcast.lane.b32.xlu0 %v1883_v21, 256  ;;  %1878 = vbcast.lane.b32.xlu1 %v1876_v5, 256 }
 0x3f3   :  { %v1774_v33 = vpop.xlane.xlu1 %1773  ;;  %v1776_v13 = vpop.xlane.xlu0 %1775 }
 0x3f5   :  { %1899 = vbcast.lane.b32.xlu0 %v1897_v22, 256  ;;  %1892 = vbcast.lane.b32.xlu1 %v1890_v24, 256 }
 0x3f7   :  { %v1778_v15 = vpop.xlane.xlu1 %1777 }
 0x3f9   :  { %1913 = vbcast.lane.b32.xlu0 %v1911_v25, 256  ;;  %1906 = vbcast.lane.b32.xlu1 %v1904_v2, 256 }
 0x45f   :  { %v1865_v36 = vpop.permute.xlu0 %1864  ;;  %v1872_v23 = vpop.permute.xlu1 %1871 }
 0x460   :  { %v1923_v37 = vmul.f32 %v1865_v36, %v1764_v26  ;;  %v1924_v19 = vmul.f32 %v1872_v23, %v1766_v3 }
 0x462   :  { %1941 = vperm.xlu1 %2155, %v1923_v37   ;;  %1944 = vperm.xlu0 %2156, %v1924_v19  }
 0x463   :  { %v1886_v40 = vpop.permute.xlu0 %1885  ;;  %v1879_v31 = vpop.permute.xlu1 %1878 }
 0x464   :  { %v1925_v41 = vmul.f32 %v1879_v31, %v1768_v14  ;;  %v1926_v43 = vmul.f32 %v1886_v40, %v1770_v7 }
 0x466   :  { %1947 = vperm.xlu1 %2155, %v1925_v41  }
 0x467   :  { %v1900_v27 = vpop.permute.xlu0 %1899  ;;  %v1893_v42 = vpop.permute.xlu1 %1892 }
 0x468   :  { %v1927_v44 = vmul.f32 %v1893_v42, %v1772_v10  ;;  %v1928_v46 = vmul.f32 %v1900_v27, %v1774_v33 }
 0x46a   :  { %1950 = vperm.xlu1 %2155, %v1926_v43   ;;  %1953 = vperm.xlu0 %2156, %v1927_v44  }
 0x46b   :  { %v1907_v45 = vpop.permute.xlu1 %1906  ;;  %v1914_v39 = vpop.permute.xlu0 %1913 }
 0x46c   :  { %v1929_v28 = vmul.f32 %v1907_v45, %v1776_v13  ;;  %v1930_v17 = vmul.f32 %v1914_v39, %v1778_v15 }
 0x46e   :  { %1956 = vperm.xlu1 %2155, %v1928_v46   ;;  %1959 = vperm.xlu0 %2156, %v1929_v28  }
 0x472   :  { %1962 = vperm.xlu1 %2155, %v1930_v17  }
 0x4e1   :  { %v1942_v29 = vpop.permute.xlu1 %1941  ;;  %v1945_v47 = vpop.permute.xlu0 %1944 }
 0x4e2   :  { %v1971_v49 = vrot.slane %v1945_v47, %v2792_v53  ;;  %v1967_v32 = vrot.slane %v1942_v29, %v2792_v53 }
 0x4e4   :  { %v1996_v55 = vsel %vm1208_vm1, %v1971_v49, %v1967_v32 }
 0x4e5   :  { %v1948_v48 = vpop.permute.xlu1 %1947 }
 0x4e6   :  { %v1975_v30 = vrot.slane %v1948_v48, %v2792_v53 }
 0x4e8   :  { %v1997_v38 = vsel %vm1210_vm2, %v1975_v30, %v1996_v55 }
 0x4e9   :  { %v1954_v51 = vpop.permute.xlu0 %1953  ;;  %v1951_v50 = vpop.permute.xlu1 %1950 }
 0x4ea   :  { %v1979_v56 = vrot.slane %v1951_v50, %v2792_v53  ;;  %v1983_v54 = vrot.slane %v1954_v51, %v2792_v53 }
 0x4ec   :  { %v1998_v57 = vsel %vm1212_vm3, %v1979_v56, %v1997_v38 }
 0x4ed   :  { %v1960_v58 = vpop.permute.xlu0 %1959  ;;  %v1957_v59 = vpop.permute.xlu1 %1956  ;;  %v1999_v1 = vsel %vm1214_vm4, %v1983_v54, %v1998_v57 }
 0x4ee   :  { %v1987_v0 = vrot.slane %v1957_v59, %v2792_v53  ;;  %v1991_v60 = vrot.slane %v1960_v58, %v2792_v53 }
 0x4f0   :  { %v2000_v61 = vsel %vm1216_vm5, %v1987_v0, %v1999_v1 }
 0x4f1   :  { %v1963_v62 = vpop.permute.xlu1 %1962  ;;  %v2001_v34 = vsel %vm1218_vm6, %v1991_v60, %v2000_v61 }
 0x4f2   :  { %v1995_v63 = vrot.slane %v1963_v62, %v2792_v53 }
 0x4f4   :  { %v2002_v4 = vsel %vm1220_vm7, %v1995_v63, %v2001_v34 }
 0x4f5   :  { %2005 = vst.msk [vmem:[#allocation13] sm:$0xff] %vm2004_vm8, %v2002_v4 }
 0x4f6   :  { %2355 = shalt.err (!%p2352_p10)
}
 0x4f7   :  { %s2356_s14 = scalar_lea.hbm %s2852_s8, 128 }
 0x4f8   :  { %p2357_p11 = scmp.ne.s32.totalorder %s2852_s8, %s2356_s14  ;;  %p2360_p12 = scmp.lt.u32.totalorder %s2356_s14, %s2852_s8 }
 0x4fa   :  { %p2362_p13 = pnand %p2360_p12, %p2357_p11 }
 0x4fc   :  { %2365 = shalt.err (!%p2362_p13)
}
 0x4fd   :  { %2015 = dma.vmem_to_hbm [thread:$0]  %s2013_s10, 128, %s2852_s8, [#allocation4]  }
 0x4fe   :  { %2374 = dma.done.wait [#allocation4], 128  }
 0x4ff   :  { %2375 = vsyncadd [#allocation4], 4294967168 }
 0x500   :  { %2019 = vsyncpa [#allocation3], 1 }
 0x501   :  { %2020 = vsyncpa [#allocation6], 1 }
 0x502   :  { %2021 = vsyncpa [#allocation9], 1 }
 0x503   :  { %2022 = vsyncpa [#allocation12], 1 }
 0x504   :  { %2023 = vsyncpa [#allocation4], 1 }

</bundles_post_ra>
